<compile_context>
chip_gen: v6e
topology: v6e:2x2x1
jax: 0.10.0
libtpu: 0.0.40
codegen_flags: <defaults>
</compile_context>

<pallas_src>
import functools

import jax
import jax.numpy as jnp
from jax.experimental import pallas as pl
from jax.experimental.pallas import tpu as pltpu

EPS = 1e-5  # nn.BatchNorm2d default eps (training-mode batch statistics)


# ------------------------------ small helpers ------------------------------ #

def _pick_row_tile(rows, target=1024):
    """Largest row tile <= target that divides `rows` and is a multiple of 8."""
    if rows <= target:
        return rows
    t = target - (target % 8)
    while t >= 8 and rows % t:
        t -= 8
    return t if t >= 8 else rows


def _vmem_limit(block_bytes):
    """Per-call VMEM limit: double-buffered blocks + headroom, <= 40 MiB (v7x safe)."""
    return int(min(max(2 * block_bytes + (8 << 20), 16 << 20), 40 << 20))


def _expanded_conv_weight(w_oihw, Wp, Wo, stride):
    """(Cout, Cin, 3, 3) -> (3*Wp*Cin, Wo*Cout) bf16 slab.

    Row index (kh, w_in, ci), column index (wo, co).  Entry = w[co, ci, kh, kw]
    iff w_in == wo*stride + kw, else 0.  A single GEMM of the three kh-shifted
    padded input row-slabs against this slab is the whole 3x3 conv, with a
    natively lane-dense (Ho, Wo*Cout) result.
    """
    w9 = jnp.transpose(w_oihw, (2, 3, 1, 0))                  # (kh, kw, Cin, Cout)
    win = jnp.arange(Wp)[None, :, None]
    wo = jnp.arange(Wo)[None, None, :]
    kw = jnp.arange(3)[:, None, None]
    onehot = (win == wo * stride + kw).astype(w9.dtype)        # (kw, Wp, Wo)
    slab = jnp.einsum("hkio,kwv->hwivo", w9, onehot)           # (kh, Wp, Cin, Wo, Cout)
    Cout, Cin = w_oihw.shape[0], w_oihw.shape[1]
    return slab.reshape(3 * Wp * Cin, Wo * Cout).astype(jnp.bfloat16)


def _tile_channels(vec_c, reps):
    """(C,) -> (1, reps*C) with channel fastest (matches the (.., W*C) layout)."""
    c = vec_c.shape[0]
    return jnp.tile(vec_c.reshape(1, c).astype(jnp.float32), (1, reps))


# ----------------------------- Pallas kernels ------------------------------ #

def _stats_kernel(x_ref, sum_ref, sq_ref):
    """Channel sums / sums-of-squares, accumulated across the grid (arbitrary axis)."""
    @pl.when(pl.program_id(0) == 0)
    def _init():
        sum_ref[...] = jnp.zeros_like(sum_ref)
        sq_ref[...] = jnp.zeros_like(sq_ref)

    x = x_ref[...]
    sum_ref[...] += jnp.sum(x, axis=0, keepdims=True)
    sq_ref[...] += jnp.sum(x * x, axis=0, keepdims=True)


def _pad_bn_relu_patches(x_ref, scale_ref, shift_ref, xpad_ref,
                         *, pad, cin, stride, ho, apply_bn_relu):
    """Fused (optional) BN+ReLU prologue -> zero-halo VMEM pad -> im2col patches."""
    # Zero the padded scratch every step: the halo must be exactly 0 (PyTorch conv
    # zero-padding of the BN-ReLU output), and scratch persists across grid steps.
    xpad_ref[...] = jnp.zeros_like(xpad_ref)
    x = x_ref[0].astype(jnp.float32)                      # (H, W*Cin)
    if apply_bn_relu:
        x = jnp.maximum(x * scale_ref[...] + shift_ref[...], 0.0)
    h, wc = x.shape
    xpad_ref[pad:pad + h, pad * cin:pad * cin + wc] = x

    if stride == 1:
        rows = [xpad_ref[kh:kh + ho, :] for kh in range(3)]
    else:
        # TODO(synk): replace strided reads with a space-to-depth phase split for stride>1.
        rows = [xpad_ref[pl.ds(kh, ho, stride=stride), :] for kh in range(3)]
    return jnp.concatenate(rows, axis=1).astype(jnp.bfloat16)   # (Ho, 3*Wp*Cin)


def _conv_bn_stats_kernel(x_ref, scale_ref, shift_ref, w_ref, b_ref,
                          o_ref, sum_ref, sq_ref, xpad_ref,
                          *, pad, cin, stride, ho, apply_bn_relu):
    """[BN+ReLU ->] Conv3x3 (+bias), bf16 lane-dense output, fused output BN stats."""
    @pl.when(pl.program_id(0) == 0)
    def _init():
        sum_ref[...] = jnp.zeros_like(sum_ref)
        sq_ref[...] = jnp.zeros_like(sq_ref)

    patches = _pad_bn_relu_patches(x_ref, scale_ref, shift_ref, xpad_ref,
                                   pad=pad, cin=cin, stride=stride, ho=ho,
                                   apply_bn_relu=apply_bn_relu)
    out = jnp.dot(patches, w_ref[...], preferred_element_type=jnp.float32) + b_ref[...]

    # Batch stats of this conv's own output (for the following BatchNorm), in f32.
    sum_ref[...] += jnp.sum(out, axis=0, keepdims=True)
    sq_ref[...] += jnp.sum(out * out, axis=0, keepdims=True)

    o_ref[0] = out.astype(o_ref.dtype)


def _conv_residual_kernel(x_ref, scale_ref, shift_ref, w_ref, b_ref,
                          skip_ref, sk_scale_ref, sk_shift_ref, o_ref, xpad_ref,
                          *, pad, cin, ho):
    """BN2+ReLU -> Conv3x3 (+bias) -> + BN3(skip) residual add, all in one kernel."""
    patches = _pad_bn_relu_patches(x_ref, scale_ref, shift_ref, xpad_ref,
                                   pad=pad, cin=cin, stride=1, ho=ho,
                                   apply_bn_relu=True)
    out = jnp.dot(patches, w_ref[...], preferred_element_type=jnp.float32) + b_ref[...]
    out = out + skip_ref[0].astype(jnp.float32) * sk_scale_ref[...] + sk_shift_ref[...]
    o_ref[0] = out.astype(o_ref.dtype)


# ------------------------------ JAX wrappers ------------------------------- #

def _channel_stats(x_nhwc):
    """Training-mode BN stats (mean, biased var) of the input, lane-dense row tiles."""
    N, H, W, C = x_nhwc.shape
    pixels = N * H * W
    r = 128 // C if (C <= 128 and 128 % C == 0) else 1
    while r > 1 and pixels % r:
        r -= 1
    L = r * C
    rows = pixels // r
    x2 = x_nhwc.reshape(rows, L).astype(jnp.float32)
    tile = _pick_row_tile(rows)
    ssum, ssq = pl.pallas_call(
        _stats_kernel,
        out_shape=(jax.ShapeDtypeStruct((1, L), jnp.float32),
                   jax.ShapeDtypeStruct((1, L), jnp.float32)),
        grid=(rows // tile,),
        in_specs=[pl.BlockSpec((tile, L), lambda i: (i, 0))],
        out_specs=(pl.BlockSpec((1, L), lambda i: (0, 0)),
                   pl.BlockSpec((1, L), lambda i: (0, 0))),
        compiler_params=pltpu.CompilerParams(
            dimension_semantics=("arbitrary",),
            vmem_limit_bytes=_vmem_limit(2 * tile * L * 4)),
    )(x2)
    s = ssum.reshape(r, C).sum(axis=0)
    q = ssq.reshape(r, C).sum(axis=0)
    mean = s / pixels
    # TODO(synk): Welford/two-pass variance if tighter parity with f32 PyTorch is needed.
    var = jnp.maximum(q / pixels - mean * mean, 0.0)
    return mean, var


def _conv3x3(x2d, H, W, Cin, w_oihw, bias, *, stride, padding, scale=None, shift=None):
    """3x3 conv with optional fused BN+ReLU prologue and fused output BN stats.

    x2d: (N, H, W*Cin) f32 (channel fastest).  Returns a bf16 lane-dense
    (N, Ho, Wo*Cout) output plus mean/var of that output (computed in f32).
    """
    N = x2d.shape[0]
    Cout = w_oihw.shape[0]
    Hp, Wp = H + 2 * padding, W + 2 * padding
    Ho, Wo = (Hp - 3) // stride + 1, (Wp - 3) // stride + 1
    L = Wo * Cout

    wfull = _expanded_conv_weight(w_oihw, Wp, Wo, stride)     # (3*Wp*Cin, Wo*Cout) bf16
    b_t = _tile_channels(bias, Wo)
    apply_bn_relu = scale is not None
    if not apply_bn_relu:
        scale = jnp.ones((Cin,), jnp.float32)
        shift = jnp.zeros((Cin,), jnp.float32)
    scale_t = _tile_channels(scale, W)
    shift_t = _tile_channels(shift, W)

    block_bytes = (2 * (H * W * Cin * 4 + Ho * L * 2)     # double-buffered x / out
                   + wfull.size * 2 + Hp * Wp * Cin * 4)   # resident weight + scratch
    # TODO(synk): for large H*W, tile output rows with a 1-row halo instead of whole images.
    kern = functools.partial(_conv_bn_stats_kernel, pad=padding, cin=Cin,
                             stride=stride, ho=Ho, apply_bn_relu=apply_bn_relu)
    out, ssum, ssq = pl.pallas_call(
        kern,
        out_shape=(jax.ShapeDtypeStruct((N, Ho, L), jnp.bfloat16),
                   jax.ShapeDtypeStruct((1, L), jnp.float32),
                   jax.ShapeDtypeStruct((1, L), jnp.float32)),
        grid=(N,),
        in_specs=[pl.BlockSpec((1, H, W * Cin), lambda n: (n, 0, 0)),
                  pl.BlockSpec((1, W * Cin), lambda n: (0, 0)),
                  pl.BlockSpec((1, W * Cin), lambda n: (0, 0)),
                  pl.BlockSpec(wfull.shape, lambda n: (0, 0)),
                  pl.BlockSpec((1, L), lambda n: (0, 0))],
        out_specs=(pl.BlockSpec((1, Ho, L), lambda n: (n, 0, 0)),
                   pl.BlockSpec((1, L), lambda n: (0, 0)),
                   pl.BlockSpec((1, L), lambda n: (0, 0))),
        scratch_shapes=[pltpu.VMEM((Hp, Wp * Cin), jnp.float32)],
        compiler_params=pltpu.CompilerParams(
            dimension_semantics=("arbitrary",),   # stats accumulate across the batch axis
            vmem_limit_bytes=_vmem_limit(block_bytes)),
    )(x2d, scale_t, shift_t, wfull, b_t)

    count = N * Ho * Wo
    mean = ssum.reshape(Wo, Cout).sum(axis=0) / count
    var = jnp.maximum(ssq.reshape(Wo, Cout).sum(axis=0) / count - mean * mean, 0.0)
    return out, (Ho, Wo), mean, var


def _conv3x3_residual(h2d, Ho, Wo, C, w_oihw, bias, scale2, shift2,
                      skip2d, scale3, shift3):
    """Final block conv (stride=1, pad=1): BN2+ReLU prologue, BN3(skip)+add epilogue."""
    N = h2d.shape[0]
    Hp, Wp = Ho + 2, Wo + 2
    L = Wo * C
    wfull = _expanded_conv_weight(w_oihw, Wp, Wo, 1)
    b_t = _tile_channels(bias, Wo)
    scale2_t = _tile_channels(scale2, Wo)
    shift2_t = _tile_channels(shift2, Wo)
    scale3_t = _tile_channels(scale3, Wo)
    shift3_t = _tile_channels(shift3, Wo)

    block_bytes = (2 * (2 * Ho * L * 2 + Ho * L * 4)       # x + skip (bf16), out (f32)
                   + wfull.size * 2 + Hp * Wp * C * 4)
    kern = functools.partial(_conv_residual_kernel, pad=1, cin=C, ho=Ho)
    out = pl.pallas_call(
        kern,
        out_shape=jax.ShapeDtypeStruct((N, Ho, L), jnp.float32),
        grid=(N,),
        in_specs=[pl.BlockSpec((1, Ho, L), lambda n: (n, 0, 0)),
                  pl.BlockSpec((1, L), lambda n: (0, 0)),
                  pl.BlockSpec((1, L), lambda n: (0, 0)),
                  pl.BlockSpec(wfull.shape, lambda n: (0, 0)),
                  pl.BlockSpec((1, L), lambda n: (0, 0)),
                  pl.BlockSpec((1, Ho, L), lambda n: (n, 0, 0)),
                  pl.BlockSpec((1, L), lambda n: (0, 0)),
                  pl.BlockSpec((1, L), lambda n: (0, 0))],
        out_specs=pl.BlockSpec((1, Ho, L), lambda n: (n, 0, 0)),
        scratch_shapes=[pltpu.VMEM((Hp, Wp * C), jnp.float32)],
        compiler_params=pltpu.CompilerParams(
            dimension_semantics=("parallel",),
            vmem_limit_bytes=_vmem_limit(block_bytes)),
    )(h2d, scale2_t, shift2_t, wfull, b_t, skip2d, scale3_t, shift3_t)
    return out


def residual_conv_forward(x_nchw, p, *, stride, padding):
    x = jnp.transpose(x_nchw, (0, 2, 3, 1)).astype(jnp.float32)   # NCHW -> NHWC
    N, H, W, Cin = x.shape
    Cout = p["w1"].shape[0]

    # BN1 batch stats over the raw input (training-mode BatchNorm).
    mean1, var1 = _channel_stats(x)
    scale1 = p["bn1_gamma"] * jax.lax.rsqrt(var1 + EPS)
    shift1 = p["bn1_beta"] - mean1 * scale1

    x2d = x.reshape(N, H, W * Cin)

    # conv1 = Conv3x3(ReLU(BN1(x))): BN1+ReLU fused into the conv prologue,
    # BN2 batch stats fused into its epilogue.  Output bf16, lane-dense.
    conv1, (Ho, Wo), mean2, var2 = _conv3x3(
        x2d, H, W, Cin, p["w1"], p["b1"], stride=stride, padding=padding,
        scale=scale1, shift=shift1)
    scale2 = p["bn2_gamma"] * jax.lax.rsqrt(var2 + EPS)
    shift2 = p["bn2_beta"] - mean2 * scale2

    # conv_skip = Conv3x3(x) (no BN prologue), BN3 stats fused.  Output bf16.
    skip, (Hs, Ws), mean3, var3 = _conv3x3(
        x2d, H, W, Cin, p["w_skip"], p["b_skip"], stride=stride, padding=1)
    assert (Hs, Ws) == (Ho, Wo), "conv_block / conv_skip spatial shapes must match"
    scale3 = p["bn3_gamma"] * jax.lax.rsqrt(var3 + EPS)
    shift3 = p["bn3_beta"] - mean3 * scale3

    # conv2 with BN2+ReLU prologue and BN3(skip) + residual add epilogue, all fused.
    out2d = _conv3x3_residual(conv1, Ho, Wo, Cout, p["w2"], p["b2"],
                              scale2, shift2, skip, scale3, shift3)
    out = out2d.reshape(N, Ho, Wo, Cout)
    return jnp.transpose(out, (0, 3, 1, 2))                        # back to NCHW


# ----------------------------- parameter setup ----------------------------- #

def init_params(key, input_dim, output_dim):
    ks = jax.random.split(key, 12)

    def conv_w(k, cout, cin):
        return 0.1 * jax.random.normal(k, (cout, cin, 3, 3), jnp.float32)

    def vec(k, c, base=0.0):
        return base + 0.1 * jax.random.normal(k, (c,), jnp.float32)

    return dict(
        bn1_gamma=vec(ks[0], input_dim, 1.0),
        bn1_beta=vec(ks[1], input_dim),
        w1=conv_w(ks[2], output_dim, input_dim),
        b1=vec(ks[3], output_dim),
        bn2_gamma=vec(ks[4], output_dim, 1.0),
        bn2_beta=vec(ks[5], output_dim),
        w2=conv_w(ks[6], output_dim, output_dim),
        b2=vec(ks[7], output_dim),
        w_skip=conv_w(ks[8], output_dim, input_dim),
        b_skip=vec(ks[9], output_dim),
        bn3_gamma=vec(ks[10], output_dim, 1.0),
        bn3_beta=vec(ks[11], output_dim),
    )


if __name__ == "__main__":
    key = jax.random.PRNGKey(0)
    kx, kp = jax.random.split(key)

    input_dim, output_dim, stride, padding = 4, 8, 1, 1
    x = jax.random.normal(kx, (2, input_dim, 16, 16), jnp.float32)  # NCHW like PyTorch
    params = init_params(kp, input_dim, output_dim)

    fwd = jax.jit(functools.partial(residual_conv_forward, stride=stride, padding=padding))
    y = fwd(x, params)
    jax.block_until_ready(y)
    assert y.shape == (2, output_dim, 16, 16) and y.dtype == jnp.float32
    assert bool(jnp.isfinite(y).all())
    print("KERNEL_OK")
</pallas_src>

<mosaic_0001>
module attributes {stable_mosaic.version = 11 : i64} {
  func.func @_stats_kernel(%arg0: i32, %arg1: memref<16x128xf32, #tpu.memory_space<vmem>>, %arg2: memref<1x128xf32, #tpu.memory_space<vmem>>, %arg3: memref<1x128xf32, #tpu.memory_space<vmem>>) attributes {dimension_semantics = [#tpu.dimension_semantics<arbitrary>], iteration_bounds = array<i64: 1>, scalar_prefetch = 0 : i64, scratch_operands = 0 : i64, tpu.core_type = #tpu.core_type<tc>, window_params = [{transform_indices = @transform_0, window_bounds = array<i64: 16, 128>}, {pipeline_mode = #tpu.pipeline_mode<synchronous>, transform_indices = @transform_1, window_bounds = array<i64: 1, 128>}, {pipeline_mode = #tpu.pipeline_mode<synchronous>, transform_indices = @transform_2, window_bounds = array<i64: 1, 128>}]} {
    %c0_i32 = arith.constant 0 : i32
    %0 = arith.cmpi eq, %arg0, %c0_i32 : i32
    %1 = arith.extui %0 : i1 to i32
    %c0_i32_0 = arith.constant 0 : i32
    %2 = arith.cmpi ne, %1, %c0_i32_0 : i32
    scf.if %2 {
      %cst_11 = arith.constant 0.000000e+00 : f32
      %15 = vector.broadcast %cst_11 : f32 to vector<1x128xf32>
      %c0_12 = arith.constant 0 : index
      %c0_13 = arith.constant 0 : index
      %16 = vector.load %arg2[%c0_12, %c0_13] : memref<1x128xf32, #tpu.memory_space<vmem>>, vector<1x128xf32>
      tpu.vector_store %arg2[%c0_12, %c0_13], %15 {strides = array<i32>} : memref<1x128xf32, #tpu.memory_space<vmem>>, vector<1x128xf32>,
      %cst_14 = arith.constant 0.000000e+00 : f32
      %17 = vector.broadcast %cst_14 : f32 to vector<1x128xf32>
      %c0_15 = arith.constant 0 : index
      %c0_16 = arith.constant 0 : index
      %18 = vector.load %arg3[%c0_15, %c0_16] : memref<1x128xf32, #tpu.memory_space<vmem>>, vector<1x128xf32>
      tpu.vector_store %arg3[%c0_15, %c0_16], %17 {strides = array<i32>} : memref<1x128xf32, #tpu.memory_space<vmem>>, vector<1x128xf32>,
    } else {
    }
    %c0 = arith.constant 0 : index
    %c0_1 = arith.constant 0 : index
    %3 = vector.load %arg1[%c0, %c0_1] : memref<16x128xf32, #tpu.memory_space<vmem>>, vector<16x128xf32>
    %c0_2 = arith.constant 0 : index
    %c0_3 = arith.constant 0 : index
    %4 = vector.load %arg2[%c0_2, %c0_3] : memref<1x128xf32, #tpu.memory_space<vmem>>, vector<1x128xf32>
    %cst = arith.constant dense<0.000000e+00> : vector<128xf32>
    %5 = vector.multi_reduction <add>, %3, %cst [0] : vector<16x128xf32> to vector<128xf32>
    %6 = vector.shape_cast %5 : vector<128xf32> to vector<1x128xf32>
    %7 = arith.addf %4, %6 : vector<1x128xf32>
    %c0_4 = arith.constant 0 : index
    %c0_5 = arith.constant 0 : index
    %8 = vector.load %arg2[%c0_4, %c0_5] : memref<1x128xf32, #tpu.memory_space<vmem>>, vector<1x128xf32>
    tpu.vector_store %arg2[%c0_4, %c0_5], %7 {strides = array<i32>} : memref<1x128xf32, #tpu.memory_space<vmem>>, vector<1x128xf32>,
    %c0_6 = arith.constant 0 : index
    %c0_7 = arith.constant 0 : index
    %9 = vector.load %arg3[%c0_6, %c0_7] : memref<1x128xf32, #tpu.memory_space<vmem>>, vector<1x128xf32>
    %10 = arith.mulf %3, %3 : vector<16x128xf32>
    %cst_8 = arith.constant dense<0.000000e+00> : vector<128xf32>
    %11 = vector.multi_reduction <add>, %10, %cst_8 [0] : vector<16x128xf32> to vector<128xf32>
    %12 = vector.shape_cast %11 : vector<128xf32> to vector<1x128xf32>
    %13 = arith.addf %9, %12 : vector<1x128xf32>
    %c0_9 = arith.constant 0 : index
    %c0_10 = arith.constant 0 : index
    %14 = vector.load %arg3[%c0_9, %c0_10] : memref<1x128xf32, #tpu.memory_space<vmem>>, vector<1x128xf32>
    tpu.vector_store %arg3[%c0_9, %c0_10], %13 {strides = array<i32>} : memref<1x128xf32, #tpu.memory_space<vmem>>, vector<1x128xf32>,
    return
  }
  func.func @transform_0(%arg0: i32) -> (i32, i32) {
    %c0_i32 = arith.constant 0 : i32
    %c0_i32_0 = arith.constant 0 : i32
    return %arg0, %c0_i32 : i32, i32
  }
  func.func @transform_1(%arg0: i32) -> (i32, i32) {
    %c0_i32 = arith.constant 0 : i32
    %c0_i32_0 = arith.constant 0 : i32
    %c0_i32_1 = arith.constant 0 : i32
    return %c0_i32, %c0_i32_0 : i32, i32
  }
  func.func @transform_2(%arg0: i32) -> (i32, i32) {
    %c0_i32 = arith.constant 0 : i32
    %c0_i32_0 = arith.constant 0 : i32
    %c0_i32_1 = arith.constant 0 : i32
    return %c0_i32, %c0_i32_0 : i32, i32
  }
}

module attributes {stable_mosaic.version = 11 : i64} {
  func.func @_conv_bn_stats_kernel(%arg0: i32, %arg1: memref<1x16x64xf32, #tpu.memory_space<vmem>>, %arg2: memref<1x64xf32, #tpu.memory_space<vmem>>, %arg3: memref<1x64xf32, #tpu.memory_space<vmem>>, %arg4: memref<216x128xbf16, #tpu.memory_space<vmem>>, %arg5: memref<1x128xf32, #tpu.memory_space<vmem>>, %arg6: memref<1x16x128xbf16, #tpu.memory_space<vmem>>, %arg7: memref<1x128xf32, #tpu.memory_space<vmem>>, %arg8: memref<1x128xf32, #tpu.memory_space<vmem>>, %arg9: memref<18x72xf32, #tpu.memory_space<vmem>>) attributes {dimension_semantics = [#tpu.dimension_semantics<arbitrary>], iteration_bounds = array<i64: 2>, scalar_prefetch = 0 : i64, scratch_operands = 1 : i64, tpu.core_type = #tpu.core_type<tc>, window_params = [{transform_indices = @transform_0, window_bounds = array<i64: 1, 16, 64>}, {pipeline_mode = #tpu.pipeline_mode<synchronous>, transform_indices = @transform_1, window_bounds = array<i64: 1, 64>}, {pipeline_mode = #tpu.pipeline_mode<synchronous>, transform_indices = @transform_2, window_bounds = array<i64: 1, 64>}, {pipeline_mode = #tpu.pipeline_mode<synchronous>, transform_indices = @transform_3, window_bounds = array<i64: 216, 128>}, {pipeline_mode = #tpu.pipeline_mode<synchronous>, transform_indices = @transform_4, window_bounds = array<i64: 1, 128>}, {transform_indices = @transform_5, window_bounds = array<i64: 1, 16, 128>}, {pipeline_mode = #tpu.pipeline_mode<synchronous>, transform_indices = @transform_6, window_bounds = array<i64: 1, 128>}, {pipeline_mode = #tpu.pipeline_mode<synchronous>, transform_indices = @transform_7, window_bounds = array<i64: 1, 128>}]} {
    %c0_i32 = arith.constant 0 : i32
    %0 = arith.cmpi eq, %arg0, %c0_i32 : i32
    %1 = arith.extui %0 : i1 to i32
    %c0_i32_0 = arith.constant 0 : i32
    %2 = arith.cmpi ne, %1, %c0_i32_0 : i32
    scf.if %2 {
      %cst_33 = arith.constant 0.000000e+00 : f32
      %41 = vector.broadcast %cst_33 : f32 to vector<1x128xf32>
      %c0_34 = arith.constant 0 : index
      %c0_35 = arith.constant 0 : index
      %42 = vector.load %arg7[%c0_34, %c0_35] : memref<1x128xf32, #tpu.memory_space<vmem>>, vector<1x128xf32>
      tpu.vector_store %arg7[%c0_34, %c0_35], %41 {strides = array<i32>} : memref<1x128xf32, #tpu.memory_space<vmem>>, vector<1x128xf32>,
      %cst_36 = arith.constant 0.000000e+00 : f32
      %43 = vector.broadcast %cst_36 : f32 to vector<1x128xf32>
      %c0_37 = arith.constant 0 : index
      %c0_38 = arith.constant 0 : index
      %44 = vector.load %arg8[%c0_37, %c0_38] : memref<1x128xf32, #tpu.memory_space<vmem>>, vector<1x128xf32>
      tpu.vector_store %arg8[%c0_37, %c0_38], %43 {strides = array<i32>} : memref<1x128xf32, #tpu.memory_space<vmem>>, vector<1x128xf32>,
    } else {
    }
    %cst = arith.constant 0.000000e+00 : f32
    %3 = vector.broadcast %cst : f32 to vector<18x72xf32>
    %c0 = arith.constant 0 : index
    %c0_1 = arith.constant 0 : index
    %4 = vector.load %arg9[%c0, %c0_1] : memref<18x72xf32, #tpu.memory_space<vmem>>, vector<18x72xf32>
    tpu.vector_store %arg9[%c0, %c0_1], %3 {strides = array<i32>} : memref<18x72xf32, #tpu.memory_space<vmem>>, vector<18x72xf32>,
    %c0_2 = arith.constant 0 : index
    %c0_3 = arith.constant 0 : index
    %c0_4 = arith.constant 0 : index
    %5 = vector.load %arg1[%c0_2, %c0_3, %c0_4] : memref<1x16x64xf32, #tpu.memory_space<vmem>>, vector<1x16x64xf32>
    %6 = vector.shape_cast %5 : vector<1x16x64xf32> to vector<16x64xf32>
    %c0_5 = arith.constant 0 : index
    %c0_6 = arith.constant 0 : index
    %7 = vector.load %arg2[%c0_5, %c0_6] : memref<1x64xf32, #tpu.memory_space<vmem>>, vector<1x64xf32>
    %8 = vector.broadcast %7 : vector<1x64xf32> to vector<16x64xf32>
    %9 = arith.mulf %6, %8 : vector<16x64xf32>
    %c0_7 = arith.constant 0 : index
    %c0_8 = arith.constant 0 : index
    %10 = vector.load %arg3[%c0_7, %c0_8] : memref<1x64xf32, #tpu.memory_space<vmem>>, vector<1x64xf32>
    %11 = vector.broadcast %10 : vector<1x64xf32> to vector<16x64xf32>
    %12 = arith.addf %9, %11 : vector<16x64xf32>
    %cst_9 = arith.constant 0.000000e+00 : f32
    %13 = vector.broadcast %cst_9 : f32 to vector<16x64xf32>
    %14 = arith.maximumf %12, %13 : vector<16x64xf32>
    %c1 = arith.constant 1 : index
    %c4 = arith.constant 4 : index
    %15 = vector.load %arg9[%c1, %c4] : memref<18x72xf32, #tpu.memory_space<vmem>>, vector<16x64xf32>
    tpu.vector_store %arg9[%c1, %c4], %14 {strides = array<i32>} : memref<18x72xf32, #tpu.memory_space<vmem>>, vector<16x64xf32>,
    %c0_10 = arith.constant 0 : index
    %c0_11 = arith.constant 0 : index
    %16 = vector.load %arg9[%c0_10, %c0_11] : memref<18x72xf32, #tpu.memory_space<vmem>>, vector<16x72xf32>
    %c1_12 = arith.constant 1 : index
    %c0_13 = arith.constant 0 : index
    %17 = vector.load %arg9[%c1_12, %c0_13] : memref<18x72xf32, #tpu.memory_space<vmem>>, vector<16x72xf32>
    %c2 = arith.constant 2 : index
    %c0_14 = arith.constant 0 : index
    %18 = vector.load %arg9[%c2, %c0_14] : memref<18x72xf32, #tpu.memory_space<vmem>>, vector<16x72xf32>
    %19 = tpu.concatenate %16, %17, %18 in 1 : vector<16x72xf32>, vector<16x72xf32>, vector<16x72xf32> -> vector<16x216xf32>
    %20 = arith.truncf %19 : vector<16x216xf32> to vector<16x216xbf16>
    %c0_15 = arith.constant 0 : index
    %c0_16 = arith.constant 0 : index
    %21 = vector.load %arg4[%c0_15, %c0_16] : memref<216x128xbf16, #tpu.memory_space<vmem>>, vector<216x128xbf16>
    %cst_17 = arith.constant dense<0.000000e+00> : vector<16x128xf32>
    %22 = tpu.matmul %20, %21, %cst_17 {dimension_numbers = #tpu.dot_dimension_numbers<[1], [0], [0], [1], [0, 0, 1, 1], [], []>} : vector<16x216xbf16>, vector<216x128xbf16>, vector<16x128xf32> -> vector<16x128xf32>
    %c0_18 = arith.constant 0 : index
    %c0_19 = arith.constant 0 : index
    %23 = vector.load %arg5[%c0_18, %c0_19] : memref<1x128xf32, #tpu.memory_space<vmem>>, vector<1x128xf32>
    %24 = vector.broadcast %23 : vector<1x128xf32> to vector<16x128xf32>
    %25 = arith.addf %22, %24 : vector<16x128xf32>
    %c0_20 = arith.constant 0 : index
    %c0_21 = arith.constant 0 : index
    %26 = vector.load %arg7[%c0_20, %c0_21] : memref<1x128xf32, #tpu.memory_space<vmem>>, vector<1x128xf32>
    %cst_22 = arith.constant dense<0.000000e+00> : vector<128xf32>
    %27 = vector.multi_reduction <add>, %25, %cst_22 [0] : vector<16x128xf32> to vector<128xf32>
    %28 = vector.shape_cast %27 : vector<128xf32> to vector<1x128xf32>
    %29 = arith.addf %26, %28 : vector<1x128xf32>
    %c0_23 = arith.constant 0 : index
    %c0_24 = arith.constant 0 : index
    %30 = vector.load %arg7[%c0_23, %c0_24] : memref<1x128xf32, #tpu.memory_space<vmem>>, vector<1x128xf32>
    tpu.vector_store %arg7[%c0_23, %c0_24], %29 {strides = array<i32>} : memref<1x128xf32, #tpu.memory_space<vmem>>, vector<1x128xf32>,
    %c0_25 = arith.constant 0 : index
    %c0_26 = arith.constant 0 : index
    %31 = vector.load %arg8[%c0_25, %c0_26] : memref<1x128xf32, #tpu.memory_space<vmem>>, vector<1x128xf32>
    %32 = arith.mulf %25, %25 : vector<16x128xf32>
    %cst_27 = arith.constant dense<0.000000e+00> : vector<128xf32>
    %33 = vector.multi_reduction <add>, %32, %cst_27 [0] : vector<16x128xf32> to vector<128xf32>
    %34 = vector.shape_cast %33 : vector<128xf32> to vector<1x128xf32>
    %35 = arith.addf %31, %34 : vector<1x128xf32>
    %c0_28 = arith.constant 0 : index
    %c0_29 = arith.constant 0 : index
    %36 = vector.load %arg8[%c0_28, %c0_29] : memref<1x128xf32, #tpu.memory_space<vmem>>, vector<1x128xf32>
    tpu.vector_store %arg8[%c0_28, %c0_29], %35 {strides = array<i32>} : memref<1x128xf32, #tpu.memory_space<vmem>>, vector<1x128xf32>,
    %37 = arith.truncf %25 : vector<16x128xf32> to vector<16x128xbf16>
    %c0_30 = arith.constant 0 : index
    %c0_31 = arith.constant 0 : index
    %c0_32 = arith.constant 0 : index
    %38 = vector.load %arg6[%c0_30, %c0_31, %c0_32] : memref<1x16x128xbf16, #tpu.memory_space<vmem>>, vector<1x16x128xbf16>
    %39 = vector.shape_cast %38 : vector<1x16x128xbf16> to vector<16x128xbf16>
    %40 = vector.shape_cast %37 : vector<16x128xbf16> to vector<1x16x128xbf16>
    tpu.vector_store %arg6[%c0_30, %c0_31, %c0_32], %40 {strides = array<i32>} : memref<1x16x128xbf16, #tpu.memory_space<vmem>>, vector<1x16x128xbf16>,
    return
  }
  func.func @transform_0(%arg0: i32) -> (i32, i32, i32) {
    %c0_i32 = arith.constant 0 : i32
    %c0_i32_0 = arith.constant 0 : i32
    %c0_i32_1 = arith.constant 0 : i32
    return %arg0, %c0_i32, %c0_i32_0 : i32, i32, i32
  }
  func.func @transform_1(%arg0: i32) -> (i32, i32) {
    %c0_i32 = arith.constant 0 : i32
    %c0_i32_0 = arith.constant 0 : i32
    %c0_i32_1 = arith.constant 0 : i32
    return %c0_i32, %c0_i32_0 : i32, i32
  }
  func.func @transform_2(%arg0: i32) -> (i32, i32) {
    %c0_i32 = arith.constant 0 : i32
    %c0_i32_0 = arith.constant 0 : i32
    %c0_i32_1 = arith.constant 0 : i32
    return %c0_i32, %c0_i32_0 : i32, i32
  }
  func.func @transform_3(%arg0: i32) -> (i32, i32) {
    %c0_i32 = arith.constant 0 : i32
    %c0_i32_0 = arith.constant 0 : i32
    %c0_i32_1 = arith.constant 0 : i32
    return %c0_i32, %c0_i32_0 : i32, i32
  }
  func.func @transform_4(%arg0: i32) -> (i32, i32) {
    %c0_i32 = arith.constant 0 : i32
    %c0_i32_0 = arith.constant 0 : i32
    %c0_i32_1 = arith.constant 0 : i32
    return %c0_i32, %c0_i32_0 : i32, i32
  }
  func.func @transform_5(%arg0: i32) -> (i32, i32, i32) {
    %c0_i32 = arith.constant 0 : i32
    %c0_i32_0 = arith.constant 0 : i32
    %c0_i32_1 = arith.constant 0 : i32
    return %arg0, %c0_i32, %c0_i32_0 : i32, i32, i32
  }
  func.func @transform_6(%arg0: i32) -> (i32, i32) {
    %c0_i32 = arith.constant 0 : i32
    %c0_i32_0 = arith.constant 0 : i32
    %c0_i32_1 = arith.constant 0 : i32
    return %c0_i32, %c0_i32_0 : i32, i32
  }
  func.func @transform_7(%arg0: i32) -> (i32, i32) {
    %c0_i32 = arith.constant 0 : i32
    %c0_i32_0 = arith.constant 0 : i32
    %c0_i32_1 = arith.constant 0 : i32
    return %c0_i32, %c0_i32_0 : i32, i32
  }
}

module attributes {stable_mosaic.version = 11 : i64} {
  func.func @_conv_bn_stats_kernel(%arg0: i32, %arg1: memref<1x16x64xf32, #tpu.memory_space<vmem>>, %arg2: memref<1x64xf32, #tpu.memory_space<vmem>>, %arg3: memref<1x64xf32, #tpu.memory_space<vmem>>, %arg4: memref<216x128xbf16, #tpu.memory_space<vmem>>, %arg5: memref<1x128xf32, #tpu.memory_space<vmem>>, %arg6: memref<1x16x128xbf16, #tpu.memory_space<vmem>>, %arg7: memref<1x128xf32, #tpu.memory_space<vmem>>, %arg8: memref<1x128xf32, #tpu.memory_space<vmem>>, %arg9: memref<18x72xf32, #tpu.memory_space<vmem>>) attributes {dimension_semantics = [#tpu.dimension_semantics<arbitrary>], iteration_bounds = array<i64: 2>, scalar_prefetch = 0 : i64, scratch_operands = 1 : i64, tpu.core_type = #tpu.core_type<tc>, window_params = [{transform_indices = @transform_0, window_bounds = array<i64: 1, 16, 64>}, {pipeline_mode = #tpu.pipeline_mode<synchronous>, transform_indices = @transform_1, window_bounds = array<i64: 1, 64>}, {pipeline_mode = #tpu.pipeline_mode<synchronous>, transform_indices = @transform_2, window_bounds = array<i64: 1, 64>}, {pipeline_mode = #tpu.pipeline_mode<synchronous>, transform_indices = @transform_3, window_bounds = array<i64: 216, 128>}, {pipeline_mode = #tpu.pipeline_mode<synchronous>, transform_indices = @transform_4, window_bounds = array<i64: 1, 128>}, {transform_indices = @transform_5, window_bounds = array<i64: 1, 16, 128>}, {pipeline_mode = #tpu.pipeline_mode<synchronous>, transform_indices = @transform_6, window_bounds = array<i64: 1, 128>}, {pipeline_mode = #tpu.pipeline_mode<synchronous>, transform_indices = @transform_7, window_bounds = array<i64: 1, 128>}]} {
    %c0_i32 = arith.constant 0 : i32
    %0 = arith.cmpi eq, %arg0, %c0_i32 : i32
    %1 = arith.extui %0 : i1 to i32
    %c0_i32_0 = arith.constant 0 : i32
    %2 = arith.cmpi ne, %1, %c0_i32_0 : i32
    scf.if %2 {
      %cst_28 = arith.constant 0.000000e+00 : f32
      %33 = vector.broadcast %cst_28 : f32 to vector<1x128xf32>
      %c0_29 = arith.constant 0 : index
      %c0_30 = arith.constant 0 : index
      %34 = vector.load %arg7[%c0_29, %c0_30] : memref<1x128xf32, #tpu.memory_space<vmem>>, vector<1x128xf32>
      tpu.vector_store %arg7[%c0_29, %c0_30], %33 {strides = array<i32>} : memref<1x128xf32, #tpu.memory_space<vmem>>, vector<1x128xf32>,
      %cst_31 = arith.constant 0.000000e+00 : f32
      %35 = vector.broadcast %cst_31 : f32 to vector<1x128xf32>
      %c0_32 = arith.constant 0 : index
      %c0_33 = arith.constant 0 : index
      %36 = vector.load %arg8[%c0_32, %c0_33] : memref<1x128xf32, #tpu.memory_space<vmem>>, vector<1x128xf32>
      tpu.vector_store %arg8[%c0_32, %c0_33], %35 {strides = array<i32>} : memref<1x128xf32, #tpu.memory_space<vmem>>, vector<1x128xf32>,
    } else {
    }
    %cst = arith.constant 0.000000e+00 : f32
    %3 = vector.broadcast %cst : f32 to vector<18x72xf32>
    %c0 = arith.constant 0 : index
    %c0_1 = arith.constant 0 : index
    %4 = vector.load %arg9[%c0, %c0_1] : memref<18x72xf32, #tpu.memory_space<vmem>>, vector<18x72xf32>
    tpu.vector_store %arg9[%c0, %c0_1], %3 {strides = array<i32>} : memref<18x72xf32, #tpu.memory_space<vmem>>, vector<18x72xf32>,
    %c0_2 = arith.constant 0 : index
    %c0_3 = arith.constant 0 : index
    %c0_4 = arith.constant 0 : index
    %5 = vector.load %arg1[%c0_2, %c0_3, %c0_4] : memref<1x16x64xf32, #tpu.memory_space<vmem>>, vector<1x16x64xf32>
    %6 = vector.shape_cast %5 : vector<1x16x64xf32> to vector<16x64xf32>
    %c1 = arith.constant 1 : index
    %c4 = arith.constant 4 : index
    %7 = vector.load %arg9[%c1, %c4] : memref<18x72xf32, #tpu.memory_space<vmem>>, vector<16x64xf32>
    tpu.vector_store %arg9[%c1, %c4], %6 {strides = array<i32>} : memref<18x72xf32, #tpu.memory_space<vmem>>, vector<16x64xf32>,
    %c0_5 = arith.constant 0 : index
    %c0_6 = arith.constant 0 : index
    %8 = vector.load %arg9[%c0_5, %c0_6] : memref<18x72xf32, #tpu.memory_space<vmem>>, vector<16x72xf32>
    %c1_7 = arith.constant 1 : index
    %c0_8 = arith.constant 0 : index
    %9 = vector.load %arg9[%c1_7, %c0_8] : memref<18x72xf32, #tpu.memory_space<vmem>>, vector<16x72xf32>
    %c2 = arith.constant 2 : index
    %c0_9 = arith.constant 0 : index
    %10 = vector.load %arg9[%c2, %c0_9] : memref<18x72xf32, #tpu.memory_space<vmem>>, vector<16x72xf32>
    %11 = tpu.concatenate %8, %9, %10 in 1 : vector<16x72xf32>, vector<16x72xf32>, vector<16x72xf32> -> vector<16x216xf32>
    %12 = arith.truncf %11 : vector<16x216xf32> to vector<16x216xbf16>
    %c0_10 = arith.constant 0 : index
    %c0_11 = arith.constant 0 : index
    %13 = vector.load %arg4[%c0_10, %c0_11] : memref<216x128xbf16, #tpu.memory_space<vmem>>, vector<216x128xbf16>
    %cst_12 = arith.constant dense<0.000000e+00> : vector<16x128xf32>
    %14 = tpu.matmul %12, %13, %cst_12 {dimension_numbers = #tpu.dot_dimension_numbers<[1], [0], [0], [1], [0, 0, 1, 1], [], []>} : vector<16x216xbf16>, vector<216x128xbf16>, vector<16x128xf32> -> vector<16x128xf32>
    %c0_13 = arith.constant 0 : index
    %c0_14 = arith.constant 0 : index
    %15 = vector.load %arg5[%c0_13, %c0_14] : memref<1x128xf32, #tpu.memory_space<vmem>>, vector<1x128xf32>
    %16 = vector.broadcast %15 : vector<1x128xf32> to vector<16x128xf32>
    %17 = arith.addf %14, %16 : vector<16x128xf32>
    %c0_15 = arith.constant 0 : index
    %c0_16 = arith.constant 0 : index
    %18 = vector.load %arg7[%c0_15, %c0_16] : memref<1x128xf32, #tpu.memory_space<vmem>>, vector<1x128xf32>
    %cst_17 = arith.constant dense<0.000000e+00> : vector<128xf32>
    %19 = vector.multi_reduction <add>, %17, %cst_17 [0] : vector<16x128xf32> to vector<128xf32>
    %20 = vector.shape_cast %19 : vector<128xf32> to vector<1x128xf32>
    %21 = arith.addf %18, %20 : vector<1x128xf32>
    %c0_18 = arith.constant 0 : index
    %c0_19 = arith.constant 0 : index
    %22 = vector.load %arg7[%c0_18, %c0_19] : memref<1x128xf32, #tpu.memory_space<vmem>>, vector<1x128xf32>
    tpu.vector_store %arg7[%c0_18, %c0_19], %21 {strides = array<i32>} : memref<1x128xf32, #tpu.memory_space<vmem>>, vector<1x128xf32>,
    %c0_20 = arith.constant 0 : index
    %c0_21 = arith.constant 0 : index
    %23 = vector.load %arg8[%c0_20, %c0_21] : memref<1x128xf32, #tpu.memory_space<vmem>>, vector<1x128xf32>
    %24 = arith.mulf %17, %17 : vector<16x128xf32>
    %cst_22 = arith.constant dense<0.000000e+00> : vector<128xf32>
    %25 = vector.multi_reduction <add>, %24, %cst_22 [0] : vector<16x128xf32> to vector<128xf32>
    %26 = vector.shape_cast %25 : vector<128xf32> to vector<1x128xf32>
    %27 = arith.addf %23, %26 : vector<1x128xf32>
    %c0_23 = arith.constant 0 : index
    %c0_24 = arith.constant 0 : index
    %28 = vector.load %arg8[%c0_23, %c0_24] : memref<1x128xf32, #tpu.memory_space<vmem>>, vector<1x128xf32>
    tpu.vector_store %arg8[%c0_23, %c0_24], %27 {strides = array<i32>} : memref<1x128xf32, #tpu.memory_space<vmem>>, vector<1x128xf32>,
    %29 = arith.truncf %17 : vector<16x128xf32> to vector<16x128xbf16>
    %c0_25 = arith.constant 0 : index
    %c0_26 = arith.constant 0 : index
    %c0_27 = arith.constant 0 : index
    %30 = vector.load %arg6[%c0_25, %c0_26, %c0_27] : memref<1x16x128xbf16, #tpu.memory_space<vmem>>, vector<1x16x128xbf16>
    %31 = vector.shape_cast %30 : vector<1x16x128xbf16> to vector<16x128xbf16>
    %32 = vector.shape_cast %29 : vector<16x128xbf16> to vector<1x16x128xbf16>
    tpu.vector_store %arg6[%c0_25, %c0_26, %c0_27], %32 {strides = array<i32>} : memref<1x16x128xbf16, #tpu.memory_space<vmem>>, vector<1x16x128xbf16>,
    return
  }
  func.func @transform_0(%arg0: i32) -> (i32, i32, i32) {
    %c0_i32 = arith.constant 0 : i32
    %c0_i32_0 = arith.constant 0 : i32
    %c0_i32_1 = arith.constant 0 : i32
    return %arg0, %c0_i32, %c0_i32_0 : i32, i32, i32
  }
  func.func @transform_1(%arg0: i32) -> (i32, i32) {
    %c0_i32 = arith.constant 0 : i32
    %c0_i32_0 = arith.constant 0 : i32
    %c0_i32_1 = arith.constant 0 : i32
    return %c0_i32, %c0_i32_0 : i32, i32
  }
  func.func @transform_2(%arg0: i32) -> (i32, i32) {
    %c0_i32 = arith.constant 0 : i32
    %c0_i32_0 = arith.constant 0 : i32
    %c0_i32_1 = arith.constant 0 : i32
    return %c0_i32, %c0_i32_0 : i32, i32
  }
  func.func @transform_3(%arg0: i32) -> (i32, i32) {
    %c0_i32 = arith.constant 0 : i32
    %c0_i32_0 = arith.constant 0 : i32
    %c0_i32_1 = arith.constant 0 : i32
    return %c0_i32, %c0_i32_0 : i32, i32
  }
  func.func @transform_4(%arg0: i32) -> (i32, i32) {
    %c0_i32 = arith.constant 0 : i32
    %c0_i32_0 = arith.constant 0 : i32
    %c0_i32_1 = arith.constant 0 : i32
    return %c0_i32, %c0_i32_0 : i32, i32
  }
  func.func @transform_5(%arg0: i32) -> (i32, i32, i32) {
    %c0_i32 = arith.constant 0 : i32
    %c0_i32_0 = arith.constant 0 : i32
    %c0_i32_1 = arith.constant 0 : i32
    return %arg0, %c0_i32, %c0_i32_0 : i32, i32, i32
  }
  func.func @transform_6(%arg0: i32) -> (i32, i32) {
    %c0_i32 = arith.constant 0 : i32
    %c0_i32_0 = arith.constant 0 : i32
    %c0_i32_1 = arith.constant 0 : i32
    return %c0_i32, %c0_i32_0 : i32, i32
  }
  func.func @transform_7(%arg0: i32) -> (i32, i32) {
    %c0_i32 = arith.constant 0 : i32
    %c0_i32_0 = arith.constant 0 : i32
    %c0_i32_1 = arith.constant 0 : i32
    return %c0_i32, %c0_i32_0 : i32, i32
  }
}

module attributes {stable_mosaic.version = 11 : i64} {
  func.func @_conv_residual_kernel(%arg0: i32, %arg1: memref<1x16x128xbf16, #tpu.memory_space<vmem>>, %arg2: memref<1x128xf32, #tpu.memory_space<vmem>>, %arg3: memref<1x128xf32, #tpu.memory_space<vmem>>, %arg4: memref<432x128xbf16, #tpu.memory_space<vmem>>, %arg5: memref<1x128xf32, #tpu.memory_space<vmem>>, %arg6: memref<1x16x128xbf16, #tpu.memory_space<vmem>>, %arg7: memref<1x128xf32, #tpu.memory_space<vmem>>, %arg8: memref<1x128xf32, #tpu.memory_space<vmem>>, %arg9: memref<1x16x128xf32, #tpu.memory_space<vmem>>, %arg10: memref<18x144xf32, #tpu.memory_space<vmem>>) attributes {dimension_semantics = [#tpu.dimension_semantics<parallel>], iteration_bounds = array<i64: 2>, scalar_prefetch = 0 : i64, scratch_operands = 1 : i64, tpu.core_type = #tpu.core_type<tc>, window_params = [{transform_indices = @transform_0, window_bounds = array<i64: 1, 16, 128>}, {pipeline_mode = #tpu.pipeline_mode<synchronous>, transform_indices = @transform_1, window_bounds = array<i64: 1, 128>}, {pipeline_mode = #tpu.pipeline_mode<synchronous>, transform_indices = @transform_2, window_bounds = array<i64: 1, 128>}, {pipeline_mode = #tpu.pipeline_mode<synchronous>, transform_indices = @transform_3, window_bounds = array<i64: 432, 128>}, {pipeline_mode = #tpu.pipeline_mode<synchronous>, transform_indices = @transform_4, window_bounds = array<i64: 1, 128>}, {transform_indices = @transform_5, window_bounds = array<i64: 1, 16, 128>}, {pipeline_mode = #tpu.pipeline_mode<synchronous>, transform_indices = @transform_6, window_bounds = array<i64: 1, 128>}, {pipeline_mode = #tpu.pipeline_mode<synchronous>, transform_indices = @transform_7, window_bounds = array<i64: 1, 128>}, {transform_indices = @transform_8, window_bounds = array<i64: 1, 16, 128>}]} {
    %cst = arith.constant 0.000000e+00 : f32
    %0 = vector.broadcast %cst : f32 to vector<18x144xf32>
    %c0 = arith.constant 0 : index
    %c0_0 = arith.constant 0 : index
    %1 = vector.load %arg10[%c0, %c0_0] : memref<18x144xf32, #tpu.memory_space<vmem>>, vector<18x144xf32>
    tpu.vector_store %arg10[%c0, %c0_0], %0 {strides = array<i32>} : memref<18x144xf32, #tpu.memory_space<vmem>>, vector<18x144xf32>,
    %c0_1 = arith.constant 0 : index
    %c0_2 = arith.constant 0 : index
    %c0_3 = arith.constant 0 : index
    %2 = vector.load %arg1[%c0_1, %c0_2, %c0_3] : memref<1x16x128xbf16, #tpu.memory_space<vmem>>, vector<1x16x128xbf16>
    %3 = vector.shape_cast %2 : vector<1x16x128xbf16> to vector<16x128xbf16>
    %4 = arith.extf %3 : vector<16x128xbf16> to vector<16x128xf32>
    %c0_4 = arith.constant 0 : index
    %c0_5 = arith.constant 0 : index
    %5 = vector.load %arg2[%c0_4, %c0_5] : memref<1x128xf32, #tpu.memory_space<vmem>>, vector<1x128xf32>
    %6 = vector.broadcast %5 : vector<1x128xf32> to vector<16x128xf32>
    %7 = arith.mulf %4, %6 : vector<16x128xf32>
    %c0_6 = arith.constant 0 : index
    %c0_7 = arith.constant 0 : index
    %8 = vector.load %arg3[%c0_6, %c0_7] : memref<1x128xf32, #tpu.memory_space<vmem>>, vector<1x128xf32>
    %9 = vector.broadcast %8 : vector<1x128xf32> to vector<16x128xf32>
    %10 = arith.addf %7, %9 : vector<16x128xf32>
    %cst_8 = arith.constant 0.000000e+00 : f32
    %11 = vector.broadcast %cst_8 : f32 to vector<16x128xf32>
    %12 = arith.maximumf %10, %11 : vector<16x128xf32>
    %c1 = arith.constant 1 : index
    %c8 = arith.constant 8 : index
    %13 = vector.load %arg10[%c1, %c8] : memref<18x144xf32, #tpu.memory_space<vmem>>, vector<16x128xf32>
    tpu.vector_store %arg10[%c1, %c8], %12 {strides = array<i32>} : memref<18x144xf32, #tpu.memory_space<vmem>>, vector<16x128xf32>,
    %c0_9 = arith.constant 0 : index
    %c0_10 = arith.constant 0 : index
    %14 = vector.load %arg10[%c0_9, %c0_10] : memref<18x144xf32, #tpu.memory_space<vmem>>, vector<16x144xf32>
    %c1_11 = arith.constant 1 : index
    %c0_12 = arith.constant 0 : index
    %15 = vector.load %arg10[%c1_11, %c0_12] : memref<18x144xf32, #tpu.memory_space<vmem>>, vector<16x144xf32>
    %c2 = arith.constant 2 : index
    %c0_13 = arith.constant 0 : index
    %16 = vector.load %arg10[%c2, %c0_13] : memref<18x144xf32, #tpu.memory_space<vmem>>, vector<16x144xf32>
    %17 = tpu.concatenate %14, %15, %16 in 1 : vector<16x144xf32>, vector<16x144xf32>, vector<16x144xf32> -> vector<16x432xf32>
    %18 = arith.truncf %17 : vector<16x432xf32> to vector<16x432xbf16>
    %c0_14 = arith.constant 0 : index
    %c0_15 = arith.constant 0 : index
    %19 = vector.load %arg4[%c0_14, %c0_15] : memref<432x128xbf16, #tpu.memory_space<vmem>>, vector<432x128xbf16>
    %cst_16 = arith.constant dense<0.000000e+00> : vector<16x128xf32>
    %20 = tpu.matmul %18, %19, %cst_16 {dimension_numbers = #tpu.dot_dimension_numbers<[1], [0], [0], [1], [0, 0, 1, 1], [], []>} : vector<16x432xbf16>, vector<432x128xbf16>, vector<16x128xf32> -> vector<16x128xf32>
    %c0_17 = arith.constant 0 : index
    %c0_18 = arith.constant 0 : index
    %21 = vector.load %arg5[%c0_17, %c0_18] : memref<1x128xf32, #tpu.memory_space<vmem>>, vector<1x128xf32>
    %22 = vector.broadcast %21 : vector<1x128xf32> to vector<16x128xf32>
    %23 = arith.addf %20, %22 : vector<16x128xf32>
    %c0_19 = arith.constant 0 : index
    %c0_20 = arith.constant 0 : index
    %c0_21 = arith.constant 0 : index
    %24 = vector.load %arg6[%c0_19, %c0_20, %c0_21] : memref<1x16x128xbf16, #tpu.memory_space<vmem>>, vector<1x16x128xbf16>
    %25 = vector.shape_cast %24 : vector<1x16x128xbf16> to vector<16x128xbf16>
    %26 = arith.extf %25 : vector<16x128xbf16> to vector<16x128xf32>
    %c0_22 = arith.constant 0 : index
    %c0_23 = arith.constant 0 : index
    %27 = vector.load %arg7[%c0_22, %c0_23] : memref<1x128xf32, #tpu.memory_space<vmem>>, vector<1x128xf32>
    %28 = vector.broadcast %27 : vector<1x128xf32> to vector<16x128xf32>
    %29 = arith.mulf %26, %28 : vector<16x128xf32>
    %30 = arith.addf %23, %29 : vector<16x128xf32>
    %c0_24 = arith.constant 0 : index
    %c0_25 = arith.constant 0 : index
    %31 = vector.load %arg8[%c0_24, %c0_25] : memref<1x128xf32, #tpu.memory_space<vmem>>, vector<1x128xf32>
    %32 = vector.broadcast %31 : vector<1x128xf32> to vector<16x128xf32>
    %33 = arith.addf %30, %32 : vector<16x128xf32>
    %c0_26 = arith.constant 0 : index
    %c0_27 = arith.constant 0 : index
    %c0_28 = arith.constant 0 : index
    %34 = vector.load %arg9[%c0_26, %c0_27, %c0_28] : memref<1x16x128xf32, #tpu.memory_space<vmem>>, vector<1x16x128xf32>
    %35 = vector.shape_cast %34 : vector<1x16x128xf32> to vector<16x128xf32>
    %36 = vector.shape_cast %33 : vector<16x128xf32> to vector<1x16x128xf32>
    tpu.vector_store %arg9[%c0_26, %c0_27, %c0_28], %36 {strides = array<i32>} : memref<1x16x128xf32, #tpu.memory_space<vmem>>, vector<1x16x128xf32>,
    return
  }
  func.func @transform_0(%arg0: i32) -> (i32, i32, i32) {
    %c0_i32 = arith.constant 0 : i32
    %c0_i32_0 = arith.constant 0 : i32
    %c0_i32_1 = arith.constant 0 : i32
    return %arg0, %c0_i32, %c0_i32_0 : i32, i32, i32
  }
  func.func @transform_1(%arg0: i32) -> (i32, i32) {
    %c0_i32 = arith.constant 0 : i32
    %c0_i32_0 = arith.constant 0 : i32
    %c0_i32_1 = arith.constant 0 : i32
    return %c0_i32, %c0_i32_0 : i32, i32
  }
  func.func @transform_2(%arg0: i32) -> (i32, i32) {
    %c0_i32 = arith.constant 0 : i32
    %c0_i32_0 = arith.constant 0 : i32
    %c0_i32_1 = arith.constant 0 : i32
    return %c0_i32, %c0_i32_0 : i32, i32
  }
  func.func @transform_3(%arg0: i32) -> (i32, i32) {
    %c0_i32 = arith.constant 0 : i32
    %c0_i32_0 = arith.constant 0 : i32
    %c0_i32_1 = arith.constant 0 : i32
    return %c0_i32, %c0_i32_0 : i32, i32
  }
  func.func @transform_4(%arg0: i32) -> (i32, i32) {
    %c0_i32 = arith.constant 0 : i32
    %c0_i32_0 = arith.constant 0 : i32
    %c0_i32_1 = arith.constant 0 : i32
    return %c0_i32, %c0_i32_0 : i32, i32
  }
  func.func @transform_5(%arg0: i32) -> (i32, i32, i32) {
    %c0_i32 = arith.constant 0 : i32
    %c0_i32_0 = arith.constant 0 : i32
    %c0_i32_1 = arith.constant 0 : i32
    return %arg0, %c0_i32, %c0_i32_0 : i32, i32, i32
  }
  func.func @transform_6(%arg0: i32) -> (i32, i32) {
    %c0_i32 = arith.constant 0 : i32
    %c0_i32_0 = arith.constant 0 : i32
    %c0_i32_1 = arith.constant 0 : i32
    return %c0_i32, %c0_i32_0 : i32, i32
  }
  func.func @transform_7(%arg0: i32) -> (i32, i32) {
    %c0_i32 = arith.constant 0 : i32
    %c0_i32_0 = arith.constant 0 : i32
    %c0_i32_1 = arith.constant 0 : i32
    return %c0_i32, %c0_i32_0 : i32, i32
  }
  func.func @transform_8(%arg0: i32) -> (i32, i32, i32) {
    %c0_i32 = arith.constant 0 : i32
    %c0_i32_0 = arith.constant 0 : i32
    %c0_i32_1 = arith.constant 0 : i32
    return %arg0, %c0_i32, %c0_i32_0 : i32, i32, i32
  }
}

</mosaic_0001>

<bundles_post_ra>
// kernel: residual_conv_forward.4
= control target key start
LH: loop header
LB: loop body
LE: loop exit
PB: predicated region body
PF: predicated region fallthrough
CT: control target
= control target key end

     0   :  { %v49_v0 = vmov 0.0   ;;  %s89_s1 = inlined_call_operand.vmem [shape: f32[1,128], index: 1, kind: output, shape index: {0}]   ;;  %s90_s2 = inlined_call_operand.vmem [shape: f32[1,128], index: 2, kind: output, shape index: {1}]   ;;  %s91_s0 = inlined_call_operand.vmem [shape: f32[16,128], index: 0, kind: input, shape index: {}]  }
   0x1   :  { %14 = vst [vmem:[%s89_s1] sm:$0x1] %v49_v0  ;;  %15 = vst [vmem:[%s90_s2] sm:$0x1] %v49_v0  ;;  %v16_v1 = vld [vmem:[%s91_s0] sm:$0xff]  ;;  %v17_v2 = vld [vmem:[%s91_s0 + $0x8] sm:$0xff] }
   0x2   :  { %v19_v3 = vadd.f32 %v17_v2, %v16_v1  ;;  %v29_v4 = vmul.f32 %v16_v1, %v16_v1  ;;  %v30_v5 = vmul.f32 %v17_v2, %v17_v2 }
   0x4   :  { %v20_v6 = vrot.slane %v19_v3, 4  ;;  %v31_v7 = vadd.f32 %v30_v5, %v29_v4 }
   0x6   :  { %v21_v8 = vadd.f32 %v20_v6, %v19_v3  ;;  %v32_v9 = vrot.slane %v31_v7, 4 }
   0x8   :  { %v22_v10 = vrot.slane %v21_v8, 2  ;;  %v33_v11 = vadd.f32 %v32_v9, %v31_v7  ;;  %v18_v16 = vld [vmem:[%s89_s1] sm:$0x1] }
   0x9   :  { %v28_v19 = vld [vmem:[%s90_s2] sm:$0x1] }
   0xa   :  { %v23_v12 = vadd.f32 %v22_v10, %v21_v8  ;;  %v34_v13 = vrot.slane %v33_v11, 2 }
   0xc   :  { %v24_v14 = vrot.slane %v23_v12, 1  ;;  %v35_v15 = vadd.f32 %v34_v13, %v33_v11 }
   0xe   :  { %v25_v17 = vadd.f32 %v24_v14, %v23_v12  ;;  %v36_v18 = vrot.slane %v35_v15, 1 }
  0x10   :  { %v26_v20 = vadd.f32 %v25_v17, %v18_v16  ;;  %v37_v21 = vadd.f32 %v36_v18, %v35_v15 }
  0x12   :  { %27 = vst [vmem:[%s89_s1] sm:$0x1] %v26_v20  ;;  %v38_v22 = vadd.f32 %v37_v21, %v28_v19 }
  0x14   :  { %39 = vst [vmem:[%s90_s2] sm:$0x1] %v38_v22 }

// kernel: tile.38
= control target key start
LH: loop header
LB: loop body
LE: loop exit
PB: predicated region body
PF: predicated region fallthrough
CT: control target
= control target key end

     0   :  { %s20_s0 = inlined_call_operand.<no memory space> [shape: f32[], index: 0, kind: input, shape index: {}]   ;;  %s21_s1 = inlined_call_operand.vmem [shape: f32[1,64], index: 1, kind: output, shape index: {}]  }
   0x1   :  { %v2_v0 = vstv %s20_s0 }
   0x2   :  { %3 = vst [vmem:[%s21_s1] sm:$0x1] %v2_v0 }

// kernel: residual_conv_forward.5
= control target key start
LH: loop header
LB: loop body
LE: loop exit
PB: predicated region body
PF: predicated region fallthrough
CT: control target
= control target key end

     0   :  { %s744_s24 = smov 0   ;;  %s837_s0 = inlined_call_operand.vmem [shape: f32[2,16,64], index: 0, kind: input, shape index: {}]   ;;  %s838_s1 = inlined_call_operand.vmem [shape: f32[1,64], index: 1, kind: input, shape index: {}]   ;;  %s839_s2 = inlined_call_operand.vmem [shape: f32[1,64], index: 2, kind: input, shape index: {}]   ;;  %s840_s3 = inlined_call_operand.vmem [shape: bf16[216,128], index: 3, kind: input, shape index: {}]   ;;  %s841_s4 = inlined_call_operand.vmem [shape: f32[1,128], index: 4, kind: input, shape index: {}]   ;;  %s842_s5 = inlined_call_operand.vmem [shape: bf16[2,16,128], index: 5, kind: output, shape index: {0}]   ;;  %s843_s6 = inlined_call_operand.vmem [shape: f32[1,128], index: 6, kind: output, shape index: {1}]   ;;  %s844_s7 = inlined_call_operand.vmem [shape: f32[1,128], index: 7, kind: output, shape index: {2}]  }
   0x1 LB: > { %s611_s25 = sadd.s32 4294967295, %s696_s24   ;;  %p615_p0 = scmp.ge.s32.totalorder %s696_s24, 1  ;;  %s696_s24 = sphi %s744_s24, %s18_s24  }
   0x2   : > { %p232_p1 = scmp.lt.s32.totalorder %s696_s24, 3 }
   0x4   : > { %p233_p2 = pnand %p615_p0, %p232_p1 }
   0x5   : > { %p264_p3 = scmp.lt.s32.totalorder (!%p233_p2), %s611_s25, 1  ;;  %p620_p4 = scmp.ne.s32.totalorder (!%p233_p2), %s611_s25, 0 }
   0x6   : > { %236 = sbr.rel (%p233_p2) target bundleno = 499 (0x1f3), region = 40 }
   0xb   : > { %s265_s26 = scalar_select %p264_p3, %s611_s25, 1 }
   0xc   : > { %278 = sbr.rel (%p620_p4) target bundleno = 19 (0x13), region = 44 }
   0xd   : > { %s643_s27 = sshll.u32 %s265_s26, 4  ;;  %s644_s28 = sshll.u32 %s265_s26, 3 }
   0xe   : > { %s268_s8 = scalar_lea.vmem %s837_s0, %s643_s27  ;;  %s758_s11 = scalar_lea.vmem %s842_s5, %s644_s28 }
  0x11   : > { %v698_v0 = vmov 0.0  }
  0x12   : > { %279 = vst [vmem:[%s843_s6] sm:$0x1] %v698_v0  ;;  %280 = vst [vmem:[%s844_s7] sm:$0x1] %v698_v0 }
  0x13 PF: > { %v286_v1 = vld [vmem:[%s268_s8] sm:$0xff]  ;;  %v287_v2 = vld [vmem:[%s268_s8 + $0x8] sm:$0xff]  ;;  %vm281_vm0 = vcmask 588800   ;;  %v699_v7 = vmov 0.0   ;;  %vm284_vm1 = vcmask 582656   ;;  %s700_s20 = smov 4  }
  0x14   : > { %v621_v3 = vld [vmem:[%s838_s1] ss:$0 sm:$0xff]  ;;  %282 = vst.msk [vmem:[#allocation2] sm:$0xff] %vm281_vm0, %v699_v7  ;;  %283 = vst.msk [vmem:[#allocation2 + $0x8] sm:$0xff] %vm281_vm0, %v699_v7  ;;  %v676_v12 = vld [vmem:[%s840_s3 + $0x38] sm:$0xff]   ;;  %v701_v13 = vmov 0  }
  0x15   : > { %v295_v4 = vmul.f32 %v621_v3, %v286_v1  ;;  %v296_v5 = vmul.f32 %v621_v3, %v287_v2  ;;  %v622_v6 = vld [vmem:[%s839_s2] ss:$0 sm:$0xff]  ;;  %285 = vst.msk [vmem:[#allocation2 + $0x10] sm:$0x3] %vm284_vm1, %v699_v7  ;;  %471 = vmatprep.subr.bf16.mxu0 %v701_v13  ;;  %v677_v14 = vld [vmem:[%s840_s3 + $0x30] sm:$0xff]   ;;  %v678_v15 = vld [vmem:[%s840_s3 + $0x28] sm:$0xff]  }
  0x16   : > { %472 = vmatpush1.bf16.msra.mxu0 %v676_v12  ;;  %v679_v16 = vld [vmem:[%s840_s3 + $0x20] sm:$0xff]   ;;  %v680_v17 = vld [vmem:[%s840_s3 + $0x18] sm:$0xff]   ;;  %v681_v18 = vld [vmem:[%s840_s3 + $0x10] sm:$0xff]   ;;  %vm467_vm2 = vcmask 1043456   ;;  %vm316_vm3 = vcmask 556064   ;;  %s702_s29 = smov 72  }
  0x17   : > { %v304_v8 = vadd.f32 %v622_v6, %v295_v4  ;;  %v305_v9 = vadd.f32 %v622_v6, %v296_v5  ;;  %473 = vmatprep.subr.bf16.mxu0 %v701_v13  ;;  %v682_v19 = vld [vmem:[%s840_s3 + $0x8] sm:$0xff]   ;;  %v683_v20 = vld [vmem:[%s840_s3] sm:$0xff]   ;;  %v686_v24 = vld [vmem:[%s840_s3 + $0x58] sm:$0xff]   ;;  %s703_s30 = smov 16   ;;  %vm343_vm4 = vcmask 130048   ;;  %vm463_vm5 = vcmask 719872  }
  0x18   : > { %v684_v21 = vld [vmem:[%s840_s3 + $0x68] ss:$0 sps:$4 sm:$0xff]   ;;  %v685_v23 = vld [vmem:[%s840_s3 + $0x60] sm:$0xff]   ;;  %v687_v25 = vld [vmem:[%s840_s3 + $0x50] sm:$0xff]  }
  0x19   : > { %v306_v10 = vmax.f32 %v304_v8, 0.0  ;;  %v307_v11 = vmax.f32 %v305_v9, 0.0  ;;  %v469_v22 = vsel %vm467_vm2, %v684_v21, 0  ;;  %v688_v27 = vld [vmem:[%s840_s3 + $0x48] sm:$0xff]   ;;  %v689_v29 = vld [vmem:[%s840_s3 + $0x40] sm:$0xff]  }
  0x1a   : > { %474 = vmatpush1.bf16.msra.mxu0 %v677_v14  ;;  %v623_v50 = vld [vmem:[%s841_s4] ss:$0 sm:$0xff] }
  0x1b   : > { %310 = vrot.lane.b32.xlu0 %v306_v10, %s700_s20  ;;  %475 = vmatprep.subr.bf16.mxu0 %v701_v13  ;;  %v512_v7 = vld [vmem:[%s843_s6] sm:$0x1] }
  0x1c   : > { %v522_v10 = vld [vmem:[%s844_s7] sm:$0x1] }
  0x1e   : > { %476 = vmatpush1.bf16.msra.mxu0 %v678_v15 }
  0x1f   : > { %312 = vrot.lane.b32.xlu0 %v307_v11, %s700_s20  ;;  %477 = vmatprep.subr.bf16.mxu0 %v701_v13 }
  0x22   : > { %478 = vmatpush1.bf16.msra.mxu0 %v679_v16 }
  0x23   : > { %479 = vmatprep.subr.bf16.mxu0 %v701_v13 }
  0x26   : > { %480 = vmatpush1.bf16.msra.mxu0 %v680_v17 }
  0x27   : > { %481 = vmatprep.subr.bf16.mxu0 %v701_v13 }
  0x2a   : > { %482 = vmatpush1.bf16.msra.mxu0 %v681_v18 }
  0x2b   : > { %483 = vmatprep.subr.bf16.mxu0 %v701_v13 }
  0x2e   : > { %484 = vmatpush1.bf16.msra.mxu0 %v682_v19 }
  0x2f   : > { %485 = vmatprep.subr.bf16.mxu0 %v701_v13 }
  0x32   : > { %486 = vmatpush1.bf16.msra.mxu0 %v683_v20 }
  0x33   : > { %491 = vmatprep.subr.bf16.mxu0 %v701_v13 }
  0x36   : > { %492 = vmatpush2.bf16.msra.mxu0 %v469_v22 }
  0x37   : > { %493 = vmatprep.subr.bf16.mxu0 %v701_v13 }
  0x3a   : > { %494 = vmatpush2.bf16.msra.mxu0 %v685_v23 }
  0x3b   : > { %495 = vmatprep.subr.bf16.mxu0 %v701_v13 }
  0x3e   : > { %496 = vmatpush2.bf16.msra.mxu0 %v686_v24 }
  0x3f   : > { %497 = vmatprep.subr.bf16.mxu0 %v701_v13 }
  0x42   : > { %498 = vmatpush2.bf16.msra.mxu0 %v687_v25 }
  0x43   : > { %499 = vmatprep.subr.bf16.mxu0 %v701_v13 }
  0x46   : > { %500 = vmatpush2.bf16.msra.mxu0 %v688_v27 }
  0x47   : > { %501 = vmatprep.subr.bf16.mxu0 %v701_v13 }
  0x4a   : > { %502 = vmatpush2.bf16.msra.mxu0 %v689_v29 }
  0x8d   : > { %v311_v26 = vpop.permute.xlu0 %310 }
  0x8e   : > { %317 = vst.msk [vmem:[#allocation2 + $0x1] sm:$0xff] %vm316_vm3, %v311_v26 }
  0x91   : > { %v313_v28 = vpop.permute.xlu0 %312 }
  0x92   : > { %318 = vst.msk [vmem:[#allocation2 + $0x9] sm:$0xff] %vm316_vm3, %v313_v28 }
  0x95   : > { %v321_v30 = vld [vmem:[#allocation2 + $0x1] sm:$0xff] }
  0x96   : > { %v319_v42 = vld [vmem:[#allocation2] sm:$0xff] }
  0x99   : > { %v322_v31 = vld [vmem:[#allocation2 + $0x9] sm:$0xff] }
  0x9a   : > { %v666_v32 = vpack.i.bf16 %v322_v31, %v321_v30  ;;  %v323_v33 = vld [vmem:[#allocation2 + $0x2] sm:$0xff]  ;;  %v324_v34 = vld [vmem:[#allocation2 + $0xa] sm:$0xff] }
  0x9b   : > { %v671_v35 = vpack.i.bf16 %v324_v34, %v323_v33  ;;  %v320_v43 = vld [vmem:[#allocation2 + $0x8] sm:$0xff] }
  0x9c   : > { %667 = vrot.lane.b32.xlu1 %v666_v32, %s702_s29 }
  0xa0   : > { %672 = vrot.lane.b32.xlu1 %v671_v35, %s703_s30 }
 0x10e   : > { %v668_v36 = vpop.permute.xlu1 %667 }
 0x10f   : > { %v670_v37 = vunpack.i.h.bf16 %v668_v36  ;;  %v669_v38 = vunpack.i.l.bf16 %v668_v36 }
 0x111   : > { %v341_v44 = vsel %vm281_vm0, %v319_v42, %v669_v38  ;;  %v342_v45 = vsel %vm281_vm0, %v320_v43, %v670_v37 }
 0x112   : > { %v673_v39 = vpop.permute.xlu1 %672  ;;  %v346_v49 = vpack.c.bf16 %v342_v45, %v341_v44 }
 0x113   : > { %v675_v40 = vunpack.i.h.bf16 %v673_v39  ;;  %v674_v41 = vunpack.i.l.bf16 %v673_v39 }
 0x115   : > { %v344_v46 = vsel %vm343_vm4, %v669_v38, %v674_v41  ;;  %v345_v47 = vsel %vm343_vm4, %v670_v37, %v675_v40 }
 0x116   : > { %v347_v48 = vpack.c.bf16 %v345_v47, %v344_v46 }
 0x118   : > { %638 = vmatprep.mubr.msk.bf16.mxu0 %vm463_vm5, %v347_v48 }
 0x119   : > { %504 = vmatmul.mubr.bf16.vlgmr.msra.gmra.mxu0 %v346_v49 }
 0x1d9   : > { %v505_v51 = vpop.f32.mrf.mxu0 }
 0x1da   : > { %v506_v53 = vadd.f32 %v623_v50, %v505_v51 }
 0x1db   : > { %v507_v52 = vpop.f32.mrf.mxu0 }
 0x1dc   : > { %v523_v57 = vmul.f32 %v506_v53, %v506_v53 }
 0x1dd   : > { %v508_v54 = vpop.f32.mrf.mxu0 }
 0x1de   : > { %v509_v55 = vadd.f32 %v623_v50, %v508_v54 }
 0x1df   : > { %v510_v56 = vpop.f32.mrf.mxu0 }
 0x1e0   : > { %v513_v58 = vadd.f32 %v509_v55, %v506_v53  ;;  %v524_v59 = vmul.f32 %v509_v55, %v509_v55  ;;  %v650_v60 = vpack.c.bf16 %v509_v55, %v506_v53 }
 0x1e2   : > { %v514_v61 = vrot.slane %v513_v58, 4  ;;  %v525_v62 = vadd.f32 %v524_v59, %v523_v57  ;;  %651 = vst [vmem:[%s758_s11] sm:$0xff] %v650_v60  }
 0x1e4   : > { %v515_v63 = vadd.f32 %v514_v61, %v513_v58  ;;  %v526_v0 = vrot.slane %v525_v62, 4 }
 0x1e6   : > { %v516_v1 = vrot.slane %v515_v63, 2  ;;  %v527_v2 = vadd.f32 %v526_v0, %v525_v62 }
 0x1e8   : > { %v517_v3 = vadd.f32 %v516_v1, %v515_v63  ;;  %v528_v4 = vrot.slane %v527_v2, 2 }
 0x1ea   : > { %v518_v5 = vrot.slane %v517_v3, 1  ;;  %v529_v6 = vadd.f32 %v528_v4, %v527_v2 }
 0x1ec   : > { %v519_v8 = vadd.f32 %v518_v5, %v517_v3  ;;  %v530_v9 = vrot.slane %v529_v6, 1 }
 0x1ee   : > { %v520_v11 = vadd.f32 %v519_v8, %v512_v7  ;;  %v531_v12 = vadd.f32 %v530_v9, %v529_v6 }
 0x1f0   : > { %521 = vst [vmem:[%s843_s6] sm:$0x1] %v520_v11  ;;  %v532_v13 = vadd.f32 %v531_v12, %v522_v10 }
 0x1f2   : > { %533 = vst [vmem:[%s844_s7] sm:$0x1] %v532_v13 }
 0x1f3 PF: > { %s18_s24 = sadd.s32 1, %s696_s24  }
 0x1f4   : > { %p15_p5 = scmp.ge.s32.totalorder %s18_s24, 4  }
 0x1f6   :  { %17 = sbr.rel (!%p15_p5) target bundleno = 1 (0x1), region = 90 }

// kernel: residual_conv_forward.6
= control target key start
LH: loop header
LB: loop body
LE: loop exit
PB: predicated region body
PF: predicated region fallthrough
CT: control target
= control target key end

     0   :  { %s722_s24 = smov 0   ;;  %s809_s0 = inlined_call_operand.vmem [shape: f32[2,16,64], index: 0, kind: input, shape index: {}]   ;;  %s810_s1 = inlined_call_operand.vmem [shape: f32[1,64], index: 1, kind: input, shape index: {}]   ;;  %s811_s2 = inlined_call_operand.vmem [shape: f32[1,64], index: 2, kind: input, shape index: {}]   ;;  %s812_s3 = inlined_call_operand.vmem [shape: bf16[216,128], index: 3, kind: input, shape index: {}]   ;;  %s813_s4 = inlined_call_operand.vmem [shape: f32[1,128], index: 4, kind: input, shape index: {}]   ;;  %s814_s5 = inlined_call_operand.vmem [shape: bf16[2,16,128], index: 5, kind: output, shape index: {0}]   ;;  %s815_s6 = inlined_call_operand.vmem [shape: f32[1,128], index: 6, kind: output, shape index: {1}]   ;;  %s816_s7 = inlined_call_operand.vmem [shape: f32[1,128], index: 7, kind: output, shape index: {2}]  }
   0x1 LB: > { %s591_s1 = sadd.s32 4294967295, %s674_s24   ;;  %p595_p0 = scmp.ge.s32.totalorder %s674_s24, 1  ;;  %s674_s24 = sphi %s722_s24, %s18_s24  }
   0x2   : > { %p232_p1 = scmp.lt.s32.totalorder %s674_s24, 3 }
   0x4   : > { %p233_p2 = pnand %p595_p0, %p232_p1 }
   0x5   : > { %p264_p3 = scmp.lt.s32.totalorder (!%p233_p2), %s591_s1, 1  ;;  %p600_p4 = scmp.ne.s32.totalorder (!%p233_p2), %s591_s1, 0 }
   0x6   : > { %236 = sbr.rel (%p233_p2) target bundleno = 492 (0x1ec), region = 40 }
   0xb   : > { %s265_s2 = scalar_select %p264_p3, %s591_s1, 1 }
   0xc   : > { %278 = sbr.rel (%p600_p4) target bundleno = 19 (0x13), region = 44 }
   0xd   : > { %s621_s25 = sshll.u32 %s265_s2, 4  ;;  %s622_s26 = sshll.u32 %s265_s2, 3 }
   0xe   : > { %s268_s29 = scalar_lea.vmem %s809_s0, %s621_s25  ;;  %s736_s9 = scalar_lea.vmem %s814_s5, %s622_s26 }
  0x11   : > { %v676_v0 = vmov 0.0  }
  0x12   : > { %279 = vst [vmem:[%s815_s6] sm:$0x1] %v676_v0  ;;  %280 = vst [vmem:[%s816_s7] sm:$0x1] %v676_v0 }
  0x13 PF: > { %v286_v1 = vld [vmem:[%s268_s29] sm:$0xff]  ;;  %vm281_vm0 = vcmask 588800   ;;  %s677_s14 = smov 4   ;;  %v678_v2 = vmov 0.0   ;;  %vm284_vm1 = vcmask 582656   ;;  %v287_v3 = vld [vmem:[%s268_s29 + $0x8] sm:$0xff] }
  0x14   : > { %290 = vrot.lane.b32.xlu0 %v286_v1, %s677_s14  ;;  %282 = vst.msk [vmem:[#allocation2] sm:$0xff] %vm281_vm0, %v678_v2  ;;  %283 = vst.msk [vmem:[#allocation2 + $0x8] sm:$0xff] %vm281_vm0, %v678_v2  ;;  %v654_v4 = vld [vmem:[%s812_s3 + $0x38] sm:$0xff]   ;;  %v679_v5 = vmov 0   ;;  %v655_v6 = vld [vmem:[%s812_s3 + $0x30] sm:$0xff]   ;;  %vm447_vm2 = vcmask 1043456  }
  0x15   : > { %285 = vst.msk [vmem:[#allocation2 + $0x10] sm:$0x3] %vm284_vm1, %v678_v2  ;;  %451 = vmatprep.subr.bf16.mxu0 %v679_v5  ;;  %v656_v7 = vld [vmem:[%s812_s3 + $0x28] sm:$0xff]   ;;  %v657_v8 = vld [vmem:[%s812_s3 + $0x20] sm:$0xff]   ;;  %v658_v9 = vld [vmem:[%s812_s3 + $0x18] sm:$0xff]   ;;  %vm296_vm3 = vcmask 556064  }
  0x16   : > { %452 = vmatpush1.bf16.msra.mxu0 %v654_v4  ;;  %v659_v10 = vld [vmem:[%s812_s3 + $0x10] sm:$0xff]   ;;  %v660_v11 = vld [vmem:[%s812_s3 + $0x8] sm:$0xff]   ;;  %v661_v12 = vld [vmem:[%s812_s3] sm:$0xff]   ;;  %s680_s20 = smov 72   ;;  %s681_s21 = smov 16   ;;  %vm323_vm4 = vcmask 130048  }
  0x17   : > { %453 = vmatprep.subr.bf16.mxu0 %v679_v5  ;;  %v662_v13 = vld [vmem:[%s812_s3 + $0x68] ss:$0 sps:$4 sm:$0xff]   ;;  %v663_v15 = vld [vmem:[%s812_s3 + $0x60] sm:$0xff]   ;;  %v664_v16 = vld [vmem:[%s812_s3 + $0x58] sm:$0xff]   ;;  %vm443_vm5 = vcmask 719872  }
  0x18   : > { %292 = vrot.lane.b32.xlu0 %v287_v3, %s677_s14  ;;  %v449_v14 = vsel %vm447_vm2, %v662_v13, 0  ;;  %v665_v17 = vld [vmem:[%s812_s3 + $0x50] sm:$0xff]   ;;  %v666_v19 = vld [vmem:[%s812_s3 + $0x48] sm:$0xff]   ;;  %v667_v21 = vld [vmem:[%s812_s3 + $0x40] sm:$0xff]  }
  0x19   : > { %v601_v42 = vld [vmem:[%s813_s4] ss:$0 sm:$0xff] }
  0x1a   : > { %454 = vmatpush1.bf16.msra.mxu0 %v655_v6  ;;  %v492_v63 = vld [vmem:[%s815_s6] sm:$0x1] }
  0x1b   : > { %455 = vmatprep.subr.bf16.mxu0 %v679_v5  ;;  %v502_v2 = vld [vmem:[%s816_s7] sm:$0x1] }
  0x1e   : > { %456 = vmatpush1.bf16.msra.mxu0 %v656_v7 }
  0x1f   : > { %457 = vmatprep.subr.bf16.mxu0 %v679_v5 }
  0x22   : > { %458 = vmatpush1.bf16.msra.mxu0 %v657_v8 }
  0x23   : > { %459 = vmatprep.subr.bf16.mxu0 %v679_v5 }
  0x26   : > { %460 = vmatpush1.bf16.msra.mxu0 %v658_v9 }
  0x27   : > { %461 = vmatprep.subr.bf16.mxu0 %v679_v5 }
  0x2a   : > { %462 = vmatpush1.bf16.msra.mxu0 %v659_v10 }
  0x2b   : > { %463 = vmatprep.subr.bf16.mxu0 %v679_v5 }
  0x2e   : > { %464 = vmatpush1.bf16.msra.mxu0 %v660_v11 }
  0x2f   : > { %465 = vmatprep.subr.bf16.mxu0 %v679_v5 }
  0x32   : > { %466 = vmatpush1.bf16.msra.mxu0 %v661_v12 }
  0x33   : > { %471 = vmatprep.subr.bf16.mxu0 %v679_v5 }
  0x36   : > { %472 = vmatpush2.bf16.msra.mxu0 %v449_v14 }
  0x37   : > { %473 = vmatprep.subr.bf16.mxu0 %v679_v5 }
  0x3a   : > { %474 = vmatpush2.bf16.msra.mxu0 %v663_v15 }
  0x3b   : > { %475 = vmatprep.subr.bf16.mxu0 %v679_v5 }
  0x3e   : > { %476 = vmatpush2.bf16.msra.mxu0 %v664_v16 }
  0x3f   : > { %477 = vmatprep.subr.bf16.mxu0 %v679_v5 }
  0x42   : > { %478 = vmatpush2.bf16.msra.mxu0 %v665_v17 }
  0x43   : > { %479 = vmatprep.subr.bf16.mxu0 %v679_v5 }
  0x46   : > { %480 = vmatpush2.bf16.msra.mxu0 %v666_v19 }
  0x47   : > { %481 = vmatprep.subr.bf16.mxu0 %v679_v5 }
  0x4a   : > { %482 = vmatpush2.bf16.msra.mxu0 %v667_v21 }
  0x86   : > { %v291_v18 = vpop.permute.xlu0 %290 }
  0x87   : > { %297 = vst.msk [vmem:[#allocation2 + $0x1] sm:$0xff] %vm296_vm3, %v291_v18 }
  0x8a   : > { %v293_v20 = vpop.permute.xlu0 %292 }
  0x8b   : > { %298 = vst.msk [vmem:[#allocation2 + $0x9] sm:$0xff] %vm296_vm3, %v293_v20 }
  0x8e   : > { %v301_v22 = vld [vmem:[#allocation2 + $0x1] sm:$0xff] }
  0x8f   : > { %v299_v34 = vld [vmem:[#allocation2] sm:$0xff] }
  0x92   : > { %v302_v23 = vld [vmem:[#allocation2 + $0x9] sm:$0xff] }
  0x93   : > { %v644_v24 = vpack.i.bf16 %v302_v23, %v301_v22  ;;  %v303_v25 = vld [vmem:[#allocation2 + $0x2] sm:$0xff]  ;;  %v304_v26 = vld [vmem:[#allocation2 + $0xa] sm:$0xff] }
  0x94   : > { %v649_v27 = vpack.i.bf16 %v304_v26, %v303_v25  ;;  %v300_v35 = vld [vmem:[#allocation2 + $0x8] sm:$0xff] }
  0x95   : > { %645 = vrot.lane.b32.xlu1 %v644_v24, %s680_s20 }
  0x99   : > { %650 = vrot.lane.b32.xlu1 %v649_v27, %s681_s21 }
 0x107   : > { %v646_v28 = vpop.permute.xlu1 %645 }
 0x108   : > { %v648_v29 = vunpack.i.h.bf16 %v646_v28  ;;  %v647_v30 = vunpack.i.l.bf16 %v646_v28 }
 0x10a   : > { %v321_v36 = vsel %vm281_vm0, %v299_v34, %v647_v30  ;;  %v322_v37 = vsel %vm281_vm0, %v300_v35, %v648_v29 }
 0x10b   : > { %v651_v31 = vpop.permute.xlu1 %650  ;;  %v326_v41 = vpack.c.bf16 %v322_v37, %v321_v36 }
 0x10c   : > { %v653_v32 = vunpack.i.h.bf16 %v651_v31  ;;  %v652_v33 = vunpack.i.l.bf16 %v651_v31 }
 0x10e   : > { %v324_v38 = vsel %vm323_vm4, %v647_v30, %v652_v33  ;;  %v325_v39 = vsel %vm323_vm4, %v648_v29, %v653_v32 }
 0x10f   : > { %v327_v40 = vpack.c.bf16 %v325_v39, %v324_v38 }
 0x111   : > { %616 = vmatprep.mubr.msk.bf16.mxu0 %vm443_vm5, %v327_v40 }
 0x112   : > { %484 = vmatmul.mubr.bf16.vlgmr.msra.gmra.mxu0 %v326_v41 }
 0x1d2   : > { %v485_v43 = vpop.f32.mrf.mxu0 }
 0x1d3   : > { %v486_v45 = vadd.f32 %v601_v42, %v485_v43 }
 0x1d4   : > { %v487_v44 = vpop.f32.mrf.mxu0 }
 0x1d5   : > { %v503_v49 = vmul.f32 %v486_v45, %v486_v45 }
 0x1d6   : > { %v488_v46 = vpop.f32.mrf.mxu0 }
 0x1d7   : > { %v489_v47 = vadd.f32 %v601_v42, %v488_v46 }
 0x1d8   : > { %v490_v48 = vpop.f32.mrf.mxu0 }
 0x1d9   : > { %v493_v50 = vadd.f32 %v489_v47, %v486_v45  ;;  %v504_v51 = vmul.f32 %v489_v47, %v489_v47  ;;  %v628_v52 = vpack.c.bf16 %v489_v47, %v486_v45 }
 0x1db   : > { %v494_v53 = vrot.slane %v493_v50, 4  ;;  %v505_v54 = vadd.f32 %v504_v51, %v503_v49  ;;  %629 = vst [vmem:[%s736_s9] sm:$0xff] %v628_v52  }
 0x1dd   : > { %v495_v55 = vadd.f32 %v494_v53, %v493_v50  ;;  %v506_v56 = vrot.slane %v505_v54, 4 }
 0x1df   : > { %v496_v57 = vrot.slane %v495_v55, 2  ;;  %v507_v58 = vadd.f32 %v506_v56, %v505_v54 }
 0x1e1   : > { %v497_v59 = vadd.f32 %v496_v57, %v495_v55  ;;  %v508_v60 = vrot.slane %v507_v58, 2 }
 0x1e3   : > { %v498_v61 = vrot.slane %v497_v59, 1  ;;  %v509_v62 = vadd.f32 %v508_v60, %v507_v58 }
 0x1e5   : > { %v499_v0 = vadd.f32 %v498_v61, %v497_v59  ;;  %v510_v1 = vrot.slane %v509_v62, 1 }
 0x1e7   : > { %v500_v3 = vadd.f32 %v499_v0, %v492_v63  ;;  %v511_v4 = vadd.f32 %v510_v1, %v509_v62 }
 0x1e9   : > { %501 = vst [vmem:[%s815_s6] sm:$0x1] %v500_v3  ;;  %v512_v5 = vadd.f32 %v511_v4, %v502_v2 }
 0x1eb   : > { %513 = vst [vmem:[%s816_s7] sm:$0x1] %v512_v5 }
 0x1ec PF: > { %s18_s24 = sadd.s32 1, %s674_s24  }
 0x1ed   : > { %p15_p5 = scmp.ge.s32.totalorder %s18_s24, 4  }
 0x1ef   :  { %17 = sbr.rel (!%p15_p5) target bundleno = 1 (0x1), region = 90 }

// kernel: residual_conv_forward.7
= control target key start
LH: loop header
LB: loop body
LE: loop exit
PB: predicated region body
PF: predicated region fallthrough
CT: control target
= control target key end

     0   :  { %s1066_s27 = smov 0   ;;  %s1211_s0 = inlined_call_operand.vmem [shape: bf16[2,16,128], index: 0, kind: input, shape index: {}]   ;;  %s1212_s1 = inlined_call_operand.vmem [shape: f32[1,128], index: 1, kind: input, shape index: {}]   ;;  %s1213_s2 = inlined_call_operand.vmem [shape: f32[1,128], index: 2, kind: input, shape index: {}]   ;;  %s1214_s3 = inlined_call_operand.vmem [shape: bf16[432,128], index: 3, kind: input, shape index: {}]   ;;  %s1215_s4 = inlined_call_operand.vmem [shape: f32[1,128], index: 4, kind: input, shape index: {}]   ;;  %s1216_s5 = inlined_call_operand.vmem [shape: bf16[2,16,128], index: 5, kind: input, shape index: {}]   ;;  %s1217_s6 = inlined_call_operand.vmem [shape: f32[1,128], index: 6, kind: input, shape index: {}]   ;;  %s1218_s7 = inlined_call_operand.vmem [shape: f32[1,128], index: 7, kind: input, shape index: {}]   ;;  %s1219_s8 = inlined_call_operand.vmem [shape: f32[2,16,128], index: 8, kind: output, shape index: {}]  }
   0x1 LB: > { %s869_s28 = sadd.s32 4294967295, %s1014_s27   ;;  %p873_p0 = scmp.ge.s32.totalorder %s1014_s27, 1  ;;  %s1014_s27 = sphi %s1066_s27, %s18_s27  }
   0x2   : > { %p272_p1 = scmp.lt.s32.totalorder %s1014_s27, 3 }
   0x4   : > { %p273_p2 = pnand %p873_p0, %p272_p1 }
   0x5   : > { %p311_p3 = scmp.lt.s32.totalorder (!%p273_p2), %s869_s28, 1  ;;  %s1017_s15 = smov (!%p273_p2), 8  }
   0x6   : > { %276 = sbr.rel (%p273_p2) target bundleno = 488 (0x1e8), region = 52  ;;  %s1019_s13 = smov (!%p273_p2), 16  }
   0x7   : > { %s1020_s14 = smov (!%p273_p2), 32  }
   0xb   : > { %vm328_vm0 = vcmask 130048   ;;  %s1221_s28 = smov (!%p311_p3, %s869_s28), 1  ;;  %v1016_v0 = vmov 0.0   ;;  %vm333_vm1 = vcmask 123904   ;;  %v880_v1 = vld [vmem:[%s1212_s1] ss:$0 sm:$0xff] }
   0xc   : > { %327 = vst [vmem:[#allocation2] sm:$0xff] %v1016_v0  ;;  %329 = vst.msk [vmem:[#allocation2 + $0x8] sm:$0xff] %vm328_vm0, %v1016_v0  ;;  %s915_s29 = sshll.u32 %s1221_s28, 3  ;;  %v881_v3 = vld [vmem:[%s1213_s2] ss:$0 sm:$0xff]  ;;  %vm361_vm2 = vcmask 1040384  }
   0xd   : > { %330 = vst [vmem:[#allocation2 + $0x10] sm:$0xff] %v1016_v0  ;;  %331 = vst.msk [vmem:[#allocation2 + $0x18] sm:$0xff] %vm328_vm0, %v1016_v0  ;;  %s315_s10 = scalar_lea.vmem %s1211_s0, %s915_s29  ;;  %v981_v15 = vld [vmem:[%s1214_s3 + $0xb8] sm:$0xff]   ;;  %v1018_v17 = vmov 0   ;;  %v986_v19 = vld [vmem:[%s1214_s3 + $0x70] sm:$0xff]   ;;  %vm374_vm3 = vcmask 1047617   ;;  %s320_s17 = scalar_lea.vmem %s1216_s5, %s915_s29 }
   0xe   : > { %332 = vst [vmem:[#allocation2 + $0x20] sm:$0x3] %v1016_v0  ;;  %334 = vst.msk [vmem:[#allocation2 + $0x28] sm:$0x3] %vm333_vm1, %v1016_v0  ;;  %v919_v2 = vld [vmem:[%s315_s10] sm:$0xff]   ;;  %v983_v16 = vld [vmem:[%s1214_s3 + $0x78] sm:$0xff]   ;;  %735 = vmatprep.subr.bf16.mxu1 %v1018_v17 }
   0xf   : > { %v920_v4 = vunpack.c.l.bf16 %v919_v2  ;;  %v921_v5 = vunpack.c.h.bf16 %v919_v2  ;;  %v984_v18 = vld [vmem:[%s1214_s3 + $0x38] sm:$0xff]   ;;  %736 = vmatpush1.bf16.msra.mxu1 %v981_v15  ;;  %v982_v20 = vld [vmem:[%s1214_s3 + $0xb0] sm:$0xff]   ;;  %926 = vmatprep.subr.bf16.mxu0 %v983_v16  ;;  %v989_v22 = vld [vmem:[%s1214_s3 + $0x68] sm:$0xff]   ;;  %vm376_vm4 = vcmask 64513   ;;  %vm382_vm5 = vcmask 1040448   ;;  %s917_s29 = sshll.u32 %s1221_s28, 4 }
  0x10   : > { %737 = vmatprep.subr.bf16.mxu1 %v1018_v17  ;;  %927 = vmatpush3.bf16.msra.mxu0 %v984_v18  ;;  %v987_v21 = vld [vmem:[%s1214_s3 + $0x30] sm:$0xff]   ;;  %v985_v23 = vld [vmem:[%s1214_s3 + $0xa8] sm:$0xff]   ;;  %v992_v25 = vld [vmem:[%s1214_s3 + $0x60] sm:$0xff]   ;;  %vm384_vm6 = vcmask 57344   ;;  %vm378_vm7 = vcmask 1047616   ;;  %vm380_vm8 = vcmask 64512   ;;  %s325_s26 = scalar_lea.vmem %s1219_s8, %s917_s29 }
  0x11   : > { %v346_v6 = vmul.f32 %v920_v4, %v880_v1  ;;  %v347_v7 = vmul.f32 %v921_v5, %v880_v1  ;;  %928 = vmatprep.subr.bf16.mxu0 %v986_v19  ;;  %v990_v24 = vld [vmem:[%s1214_s3 + $0x28] sm:$0xff]   ;;  %v988_v26 = vld [vmem:[%s1214_s3 + $0xa0] sm:$0xff]   ;;  %v995_v28 = vld [vmem:[%s1214_s3 + $0x58] sm:$0xff]   ;;  %vm404_vm9 = vcmask 1046528   ;;  %vm433_vm10 = vcmask 1045504  }
  0x12   : > { %v993_v27 = vld [vmem:[%s1214_s3 + $0x20] sm:$0xff]   ;;  %v991_v29 = vld [vmem:[%s1214_s3 + $0x98] sm:$0xff]   ;;  %v998_v31 = vld [vmem:[%s1214_s3 + $0x50] sm:$0xff]   ;;  %vm452_vm11 = vcmask 261120   ;;  %vm690_vm12 = vcmask 392192  }
  0x13   : > { %v355_v8 = vadd.f32 %v881_v3, %v346_v6  ;;  %v356_v9 = vadd.f32 %v881_v3, %v347_v7  ;;  %738 = vmatpush1.bf16.msra.mxu1 %v982_v20  ;;  %v996_v30 = vld [vmem:[%s1214_s3 + $0x18] sm:$0xff]   ;;  %v994_v32 = vld [vmem:[%s1214_s3 + $0x90] sm:$0xff]   ;;  %v1001_v34 = vld [vmem:[%s1214_s3 + $0x48] sm:$0xff]  }
  0x14   : > { %739 = vmatprep.subr.bf16.mxu1 %v1018_v17  ;;  %929 = vmatpush3.bf16.msra.mxu0 %v987_v21  ;;  %v999_v33 = vld [vmem:[%s1214_s3 + $0x10] sm:$0xff]   ;;  %v997_v35 = vld [vmem:[%s1214_s3 + $0x88] sm:$0xff]   ;;  %v1000_v37 = vld [vmem:[%s1214_s3 + $0x80] sm:$0xff]  }
  0x15   : > { %v357_v10 = vmax.f32 %v355_v8, 0.0  ;;  %v358_v11 = vmax.f32 %v356_v9, 0.0  ;;  %930 = vmatprep.subr.bf16.mxu0 %v989_v22  ;;  %v1002_v36 = vld [vmem:[%s1214_s3 + $0x8] sm:$0xff]   ;;  %v1003_v38 = vld [vmem:[%s1214_s3 + $0xd0] sm:$0xff]   ;;  %v1004_v42 = vld [vmem:[%s1214_s3 + $0x40] sm:$0xff]  }
  0x16   : > { %v1005_v43 = vld [vmem:[%s1214_s3] sm:$0xff]   ;;  %v1006_v44 = vld [vmem:[%s1214_s3 + $0xc8] sm:$0xff]  }
  0x17   : > { %v362_v12 = vrot.slane %v357_v10, 7  ;;  %v363_v13 = vrot.slane %v358_v11, 7  ;;  %740 = vmatpush1.bf16.msra.mxu1 %v985_v23  ;;  %v1007_v61 = vld [vmem:[%s1214_s3 + $0xc0] sm:$0xff]  }
  0x18   : > { %741 = vmatprep.subr.bf16.mxu1 %v1018_v17  ;;  %931 = vmatpush3.bf16.msra.mxu0 %v990_v24 }
  0x19   : > { %365 = vrot.lane.b32.xlu0 %v362_v12, %s1017_s15  ;;  %369 = vrot.lane.b32.xlu1 %v363_v13, %s1017_s15  ;;  %v364_v14 = vsel %vm361_vm2, %v362_v12, %v363_v13 }
  0x1a   : > { %932 = vmatprep.subr.bf16.mxu0 %v992_v25 }
  0x1b   : > { %742 = vmatpush1.bf16.msra.mxu1 %v988_v26 }
  0x1c   : > { %743 = vmatprep.subr.bf16.mxu1 %v1018_v17  ;;  %933 = vmatpush3.bf16.msra.mxu0 %v993_v27 }
  0x1d   : > { %367 = vrot.lane.b32.xlu0 %v364_v14, %s1017_s15  ;;  %934 = vmatprep.subr.bf16.mxu0 %v995_v28 }
  0x1f   : > { %744 = vmatpush1.bf16.msra.mxu1 %v991_v29 }
  0x20   : > { %745 = vmatprep.subr.bf16.mxu1 %v1018_v17  ;;  %935 = vmatpush3.bf16.msra.mxu0 %v996_v30 }
  0x21   : > { %936 = vmatprep.subr.bf16.mxu0 %v998_v31 }
  0x23   : > { %746 = vmatpush1.bf16.msra.mxu1 %v994_v32 }
  0x24   : > { %747 = vmatprep.subr.bf16.mxu1 %v1018_v17  ;;  %937 = vmatpush3.bf16.msra.mxu0 %v999_v33 }
  0x25   : > { %938 = vmatprep.subr.bf16.mxu0 %v1001_v34 }
  0x27   : > { %748 = vmatpush1.bf16.msra.mxu1 %v997_v35 }
  0x28   : > { %749 = vmatprep.subr.bf16.mxu1 %v1018_v17  ;;  %939 = vmatpush3.bf16.msra.mxu0 %v1002_v36 }
  0x29   : > { %940 = vmatprep.subr.bf16.mxu0 %v1004_v42  ;;  %v923_v42 = vld [vmem:[%s320_s17] sm:$0xff]  }
  0x2b   : > { %750 = vmatpush1.bf16.msra.mxu1 %v1000_v37 }
  0x2c   : > { %761 = vmatprep.subr.bf16.mxu1 %v1018_v17  ;;  %941 = vmatpush3.bf16.msra.mxu0 %v1005_v43 }
  0x2f   : > { %762 = vmatpush2.bf16.msra.mxu1 %v1003_v38 }
  0x30   : > { %763 = vmatprep.subr.bf16.mxu1 %v1018_v17 }
  0x33   : > { %764 = vmatpush2.bf16.msra.mxu1 %v1006_v44  ;;  %v924_v44 = vunpack.c.l.bf16 %v923_v42 }
  0x34   : > { %765 = vmatprep.subr.bf16.mxu1 %v1018_v17 }
  0x37   : > { %766 = vmatpush2.bf16.msra.mxu1 %v1007_v61 }
  0x8b   : > { %v366_v39 = vpop.permute.xlu0 %365  ;;  %v370_v40 = vpop.permute.xlu1 %369 }
  0x8c   : > { %375 = vst.msk [vmem:[#allocation2] sm:$0xfe] %vm374_vm3, %v366_v39 }
  0x8d   : > { %377 = vst.msk [vmem:[#allocation2 + $0x8] sm:$0xfe] %vm376_vm4, %v366_v39 }
  0x8e   : > { %383 = vst.msk [vmem:[#allocation2 + $0x20] sm:$0x1] %vm382_vm5, %v370_v40 }
  0x8f   : > { %385 = vst.msk [vmem:[#allocation2 + $0x28] sm:$0x1] %vm384_vm6, %v370_v40  ;;  %v368_v41 = vpop.permute.xlu0 %367 }
  0x90   : > { %379 = vst.msk [vmem:[#allocation2 + $0x10] sm:$0xff] %vm378_vm7, %v368_v41 }
  0x91   : > { %381 = vst.msk [vmem:[#allocation2 + $0x18] sm:$0xff] %vm380_vm8, %v368_v41 }
  0x93   : > { %v390_v47 = vld [vmem:[#allocation2] sm:$0xfe] }
  0x94   : > { %v391_v45 = vld [vmem:[#allocation2 + $0x8] sm:$0xfe]  ;;  %v394_v54 = vld [vmem:[#allocation2] sm:$0xfc]  ;;  %v405_v58 = vrot.slane %v390_v47, 1 }
  0x95   : > { %v392_v48 = vld [vmem:[#allocation2 + $0x20] sm:$0x1]  ;;  %v408_v49 = vrot.slane %v391_v45, 1  ;;  %v395_v55 = vld [vmem:[#allocation2 + $0x8] sm:$0xfc]  ;;  %v434_v2 = vrot.slane %v394_v54, 2 }
  0x96   : > { %v393_v46 = vld [vmem:[#allocation2 + $0x28] sm:$0x1]  ;;  %v396_v50 = vld [vmem:[#allocation2 + $0x20] sm:$0x3]  ;;  %v411_v53 = vrot.slane %v392_v48, 1  ;;  %v437_v3 = vrot.slane %v395_v55, 2 }
  0x97   : > { %v397_v51 = vld [vmem:[#allocation2 + $0x28] sm:$0x3]  ;;  %v413_v52 = vrot.slane %v393_v46, 1  ;;  %v388_v57 = vld [vmem:[#allocation2 + $0x10] sm:$0xff]  ;;  %v440_v59 = vrot.slane %v396_v50, 2  ;;  %v386_v25 = vld [vmem:[#allocation2] sm:$0xff] }
  0x98   : > { %v389_v56 = vld [vmem:[#allocation2 + $0x18] sm:$0xff]  ;;  %v442_v60 = vrot.slane %v397_v51, 2  ;;  %v406_v63 = vrot.slane %v388_v57, 1  ;;  %v435_v0 = vrot.slane %v388_v57, 2  ;;  %v387_v22 = vld [vmem:[#allocation2 + $0x8] sm:$0xff]  ;;  %v463_v29 = vpack.c.bf16 %v388_v57, %v386_v25 }
  0x99   : > { %v409_v62 = vrot.slane %v389_v56, 1  ;;  %v438_v1 = vrot.slane %v389_v56, 2  ;;  %v882_v46 = vld [vmem:[%s1215_s4] ss:$0 sm:$0xff] }
  0x9a   : > { %v407_v6 = vsel %vm404_vm9, %v405_v58, %v406_v63  ;;  %v412_v7 = vsel %vm404_vm9, %v406_v63, %v411_v53  ;;  %v441_v10 = vsel %vm433_vm10, %v435_v0, %v440_v59  ;;  %v436_v12 = vsel %vm433_vm10, %v434_v2, %v435_v0  ;;  %v911_v47 = vld [vmem:[%s1217_s6] ss:$0 sm:$0xff] }
  0x9b   : > { %v410_v4 = vsel %vm404_vm9, %v408_v49, %v409_v62  ;;  %v414_v5 = vsel %vm404_vm9, %v409_v62, %v413_v52  ;;  %v961_v9 = vpack.i.bf16 %v412_v7, %v407_v6  ;;  %v443_v11 = vsel %vm433_vm10, %v438_v1, %v442_v60  ;;  %v912_v58 = vld [vmem:[%s1218_s7] ss:$0 sm:$0xff] }
  0x9c   : > { %v966_v8 = vpack.i.bf16 %v414_v5, %v410_v4  ;;  %v439_v13 = vsel %vm433_vm10, %v437_v3, %v438_v1  ;;  %v976_v14 = vpack.i.bf16 %v443_v11, %v441_v10  ;;  %v787_v52 = vmul.f32 %v924_v44, %v911_v47 }
  0x9d   : > { %962 = vrot.lane.b32.xlu1 %v961_v9, %s1019_s13  ;;  %v971_v15 = vpack.i.bf16 %v439_v13, %v436_v12  ;;  %v925_v53 = vunpack.c.h.bf16 %v923_v42 }
  0x9e   : > { %967 = vrot.lane.b32.xlu0 %v966_v8, %s1019_s13 }
  0x9f   : > { %v788_v62 = vmul.f32 %v925_v53, %v911_v47 }
  0xa1   : > { %972 = vrot.lane.b32.xlu1 %v971_v15, %s1020_s14 }
  0xa2   : > { %977 = vrot.lane.b32.xlu0 %v976_v14, %s1020_s14 }
 0x10f   : > { %v963_v17 = vpop.permute.xlu1 %962 }
 0x110   : > { %v968_v16 = vpop.permute.xlu0 %967  ;;  %v965_v18 = vunpack.i.h.bf16 %v963_v17  ;;  %v964_v19 = vunpack.i.l.bf16 %v963_v17 }
 0x111   : > { %v970_v20 = vunpack.i.h.bf16 %v968_v16  ;;  %v969_v21 = vunpack.i.l.bf16 %v968_v16 }
 0x112   : > { %v459_v23 = vsel %vm328_vm0, %v387_v22, %v964_v19  ;;  %v460_v24 = vsel %vm328_vm0, %v389_v56, %v965_v18 }
 0x113   : > { %v973_v27 = vpop.permute.xlu1 %972  ;;  %v464_v28 = vpack.c.bf16 %v460_v24, %v459_v23  ;;  %v424_v34 = vsel %vm328_vm0, %v965_v18, %v970_v20  ;;  %v423_v35 = vsel %vm328_vm0, %v964_v19, %v969_v21 }
 0x114   : > { %v978_v26 = vpop.permute.xlu0 %977  ;;  %v975_v32 = vunpack.i.h.bf16 %v973_v27  ;;  %v974_v33 = vunpack.i.l.bf16 %v973_v27 }
 0x115   : > { %v980_v30 = vunpack.i.h.bf16 %v978_v26  ;;  %v979_v31 = vunpack.i.l.bf16 %v978_v26  ;;  %726 = vmatprep.mubr.bf16.mxu0 %v464_v28 }
 0x116   : > { %727 = vmatmul.mubr.bf16.vlgmr.msra.gmra.mxu0 %v463_v29  ;;  %v453_v36 = vsel %vm452_vm11, %v974_v33, %v975_v32  ;;  %v461_v38 = vsel %vm452_vm11, %v423_v35, %v974_v33 }
 0x117   : > { %v454_v37 = vsel %vm452_vm11, %v979_v31, %v980_v30  ;;  %v462_v39 = vsel %vm452_vm11, %v424_v34, %v979_v31 }
 0x118   : > { %v466_v40 = vpack.c.bf16 %v454_v37, %v453_v36  ;;  %v465_v41 = vpack.c.bf16 %v462_v39, %v461_v38 }
 0x11a   : > { %910 = vmatprep.mubr.msk.bf16.mxu1 %vm690_vm12, %v466_v40 }
 0x11b   : > { %768 = vmatmul.mubr.bf16.vlgmr.msra.gmra.mxu1 %v465_v41 }
 0x1d6   : > { %v942_v43 = vpop.f32.mrf.mxu0 }
 0x1d8   : > { %v943_v45 = vpop.f32.mrf.mxu0 }
 0x1d9   : > { %v944_v48 = vadd.f32 %v943_v45, %v942_v43 }
 0x1da   : > { %v945_v49 = vpop.f32.mrf.mxu0 }
 0x1db   : > { %v769_v50 = vpop.f32.mrf.mxu1  ;;  %v729_v51 = vadd.f32 %v944_v48, %v882_v46 }
 0x1dc   : > { %v946_v54 = vpop.f32.mrf.mxu0 }
 0x1dd   : > { %v771_v55 = vpop.f32.mrf.mxu1  ;;  %v770_v56 = vadd.f32 %v769_v50, %v729_v51  ;;  %v947_v57 = vadd.f32 %v946_v54, %v945_v49 }
 0x1df   : > { %v772_v59 = vpop.f32.mrf.mxu1  ;;  %v789_v60 = vadd.f32 %v787_v52, %v770_v56  ;;  %v732_v61 = vadd.f32 %v947_v57, %v882_v46 }
 0x1e1   : > { %v774_v63 = vpop.f32.mrf.mxu1  ;;  %v798_v0 = vadd.f32 %v912_v58, %v789_v60  ;;  %v773_v1 = vadd.f32 %v772_v59, %v732_v61 }
 0x1e3   : > { %800 = vst [vmem:[%s325_s26] sm:$0xff] %v798_v0  ;;  %v790_v2 = vadd.f32 %v788_v62, %v773_v1 }
 0x1e5   : > { %v799_v3 = vadd.f32 %v912_v58, %v790_v2 }
 0x1e7   : > { %801 = vst [vmem:[%s325_s26 + $0x8] sm:$0xff] %v799_v3 }
 0x1e8 PF: > { %s18_s27 = sadd.s32 1, %s1014_s27  }
 0x1e9   : > { %p15_p4 = scmp.ge.s32.totalorder %s18_s27, 4  }
 0x1eb   :  { %17 = sbr.rel (!%p15_p4) target bundleno = 1 (0x1), region = 85 }

</bundles_post_ra>
